<compile_context>
chip_gen: v6e
topology: v6e:2x2x1
jax: 0.10.0
libtpu: 0.0.40
codegen_flags: <defaults>
</compile_context>

<pallas_src>
import jax
import jax.numpy as jnp
from jax.experimental import pallas as pl
from jax.experimental.pallas import tpu as pltpu

P_DROP = 0.1                                   # nn.Dropout(p=0.1) semantics
KEEP_SCALE = 1.0 / (1.0 - P_DROP)              # scale kept values by 1/(1-p)
DROP_THRESHOLD = int(P_DROP * (1 << 32))       # drop iff hash < p * 2^32


def softmax_dropout_kernel(seed_ref, x_ref, o_ref):
    i = pl.program_id(0)
    tm, n = x_ref.shape

    # ---- numerically stable softmax along the last axis (f32 internally) ----
    x = x_ref[...].astype(jnp.float32)
    m = jnp.max(x, axis=-1, keepdims=True)
    e = jnp.exp(x - m)
    s = jnp.sum(e, axis=-1, keepdims=True)
    inv = (1.0 / s) * jnp.float32(KEEP_SCALE)   # dropout scale folded in

    # ---- dropout mask via a stateless counter-based hash (splitmix/lowbias32)
    # Works on TPU and in interpret mode (no pltpu.prng_* primitives needed).
    row = jax.lax.broadcasted_iota(jnp.int32, (tm, n), 0).astype(jnp.uint32)
    col = jax.lax.broadcasted_iota(jnp.int32, (tm, n), 1).astype(jnp.uint32)
    grow = jnp.uint32(i * tm) + row             # global row index
    idx = grow * jnp.uint32(n) + col            # unique per-element counter
    key = seed_ref[0].astype(jnp.uint32) * jnp.uint32(0x9E3779B1)
    h = idx ^ key
    h = (h ^ (h >> jnp.uint32(16))) * jnp.uint32(0x7FEB352D)
    h = (h ^ (h >> jnp.uint32(15))) * jnp.uint32(0x846CA68B)
    h = h ^ (h >> jnp.uint32(16))

    keep = h >= jnp.uint32(DROP_THRESHOLD)      # P(keep) = 1 - p, integer compare
    o_ref[...] = jnp.where(keep, e * inv, 0.0).astype(o_ref.dtype)


def _pick_row_tile(rows, tm):
    """Largest multiple of 8 that divides `rows` and is <= tm (else all rows)."""
    tile = min(tm, rows)
    tile -= tile % 8
    while tile >= 8:
        if rows % tile == 0:
            return tile
        tile -= 8
    return rows


def softmax_dropout(x, seed, *, tm=512):
    B, H, S, N = x.shape
    rows = B * H * S
    x2 = x.reshape(rows, N)
    tile = _pick_row_tile(rows, tm)

    out = pl.pallas_call(
        softmax_dropout_kernel,
        out_shape=jax.ShapeDtypeStruct((rows, N), x.dtype),
        grid_spec=pltpu.PrefetchScalarGridSpec(
            num_scalar_prefetch=1,
            grid=(rows // tile,),
            in_specs=[pl.BlockSpec((tile, N), lambda i, seed: (i, 0))],
            out_specs=pl.BlockSpec((tile, N), lambda i, seed: (i, 0)),
        ),
        compiler_params=pltpu.CompilerParams(
            # Stateless hash -> grid steps independent; 'parallel' lets v7x
            # shard across both TensorCores (neutral on v5e/v6e).
            dimension_semantics=("parallel",),
        ),
    )(jnp.array([seed], jnp.int32), x2)

    return out.reshape(B, H, S, N)


if __name__ == "__main__":
    # Small shapes consistent with the module's (1, 12, 384, 384) attention map.
    B, H, S = 1, 12, 128
    key = jax.random.PRNGKey(0)
    x = jax.random.normal(key, (B, H, S, S), dtype=jnp.float32)

    y = jax.block_until_ready(softmax_dropout(x, seed=0))

    assert y.shape == x.shape
    assert bool(jnp.all(jnp.isfinite(y)))

    # Kept entries, rescaled by (1-p), must match the reference softmax.
    ref = jax.nn.softmax(x, axis=-1)
    kept = y > 0
    err = jnp.max(jnp.abs(jnp.where(kept, y * (1.0 - P_DROP) - ref, 0.0)))
    assert float(err) < 1e-4, float(err)

    # Drop fraction should be roughly p = 0.1 (loose bounds to avoid flakiness).
    drop_frac = 1.0 - jnp.mean(kept.astype(jnp.float32))
    assert 0.03 < float(drop_frac) < 0.2, float(drop_frac)

    print("KERNEL_OK")
</pallas_src>

<mosaic_0001>
module attributes {stable_mosaic.version = 11 : i64} {
  func.func @softmax_dropout_kernel(%arg0: i32, %arg1: memref<1xi32, #tpu.memory_space<smem>>, %arg2: memref<512x128xf32, #tpu.memory_space<vmem>>, %arg3: memref<512x128xf32, #tpu.memory_space<vmem>>) attributes {dimension_semantics = [#tpu.dimension_semantics<parallel>], iteration_bounds = array<i64: 3>, scalar_prefetch = 1 : i64, scratch_operands = 0 : i64, tpu.core_type = #tpu.core_type<tc>, window_params = [{transform_indices = @transform_0, window_bounds = array<i64: 512, 128>}, {transform_indices = @transform_1, window_bounds = array<i64: 512, 128>}]} {
    %c0 = arith.constant 0 : index
    %c0_0 = arith.constant 0 : index
    %0 = vector.load %arg2[%c0, %c0_0] : memref<512x128xf32, #tpu.memory_space<vmem>>, vector<512x128xf32>
    %cst = arith.constant dense<0xFF800000> : vector<512xf32>
    %1 = vector.multi_reduction <maximumf>, %0, %cst [1] : vector<512x128xf32> to vector<512xf32>
    %2 = vector.shape_cast %1 : vector<512xf32> to vector<512x1xf32>
    %3 = vector.broadcast %2 : vector<512x1xf32> to vector<512x128xf32>
    %4 = arith.subf %0, %3 : vector<512x128xf32>
    %5 = math.exp %4 : vector<512x128xf32>
    %cst_1 = arith.constant dense<0.000000e+00> : vector<512xf32>
    %6 = vector.multi_reduction <add>, %5, %cst_1 [1] : vector<512x128xf32> to vector<512xf32>
    %7 = vector.shape_cast %6 : vector<512xf32> to vector<512x1xf32>
    %cst_2 = arith.constant 1.000000e+00 : f32
    %8 = vector.broadcast %cst_2 : f32 to vector<512x1xf32>
    %9 = arith.divf %8, %7 : vector<512x1xf32>
    %cst_3 = arith.constant 1.11111116 : f32
    %10 = vector.broadcast %cst_3 : f32 to vector<512x1xf32>
    %11 = arith.mulf %9, %10 : vector<512x1xf32>
    %12 = tpu.iota {dimensions = array<i32: 0>} : vector<512x128xi32>
    %13 = tpu.iota {dimensions = array<i32: 1>} : vector<512x128xi32>
    %c512_i32 = arith.constant 512 : i32
    %14 = arith.muli %arg0, %c512_i32 : i32
    %15 = vector.broadcast %14 : i32 to vector<512x128xi32>
    %16 = arith.addi %15, %12 : vector<512x128xi32>
    %c128_i32 = arith.constant 128 : i32
    %17 = vector.broadcast %c128_i32 : i32 to vector<512x128xi32>
    %18 = arith.muli %16, %17 : vector<512x128xi32>
    %19 = arith.addi %18, %13 : vector<512x128xi32>
    %c0_4 = arith.constant 0 : index
    %20 = memref.load %arg1[%c0_4] : memref<1xi32, #tpu.memory_space<smem>>
    %c-1640531535_i32 = arith.constant -1640531535 : i32
    %21 = arith.muli %20, %c-1640531535_i32 : i32
    %22 = vector.broadcast %21 : i32 to vector<512x128xi32>
    %23 = arith.xori %19, %22 : vector<512x128xi32>
    %c16_i32 = arith.constant 16 : i32
    %24 = vector.broadcast %c16_i32 : i32 to vector<512x128xi32>
    %25 = arith.shrui %23, %24 : vector<512x128xi32>
    %26 = arith.xori %23, %25 : vector<512x128xi32>
    %c2146121005_i32 = arith.constant 2146121005 : i32
    %27 = vector.broadcast %c2146121005_i32 : i32 to vector<512x128xi32>
    %28 = arith.muli %26, %27 : vector<512x128xi32>
    %c15_i32 = arith.constant 15 : i32
    %29 = vector.broadcast %c15_i32 : i32 to vector<512x128xi32>
    %30 = arith.shrui %28, %29 : vector<512x128xi32>
    %31 = arith.xori %28, %30 : vector<512x128xi32>
    %c-2073254261_i32 = arith.constant -2073254261 : i32
    %32 = vector.broadcast %c-2073254261_i32 : i32 to vector<512x128xi32>
    %33 = arith.muli %31, %32 : vector<512x128xi32>
    %c16_i32_5 = arith.constant 16 : i32
    %34 = vector.broadcast %c16_i32_5 : i32 to vector<512x128xi32>
    %35 = arith.shrui %33, %34 : vector<512x128xi32>
    %36 = arith.xori %33, %35 : vector<512x128xi32>
    %c429496729_i32 = arith.constant 429496729 : i32
    %37 = vector.broadcast %c429496729_i32 : i32 to vector<512x128xi32>
    %38 = arith.cmpi uge, %36, %37 : vector<512x128xi32>
    %39 = vector.broadcast %11 : vector<512x1xf32> to vector<512x128xf32>
    %40 = arith.mulf %5, %39 : vector<512x128xf32>
    %cst_6 = arith.constant 0.000000e+00 : f32
    %41 = vector.broadcast %cst_6 : f32 to vector<512x128xf32>
    %42 = arith.select %38, %40, %41 : vector<512x128xi1>, vector<512x128xf32>
    %c0_7 = arith.constant 0 : index
    %c0_8 = arith.constant 0 : index
    %43 = vector.load %arg3[%c0_7, %c0_8] : memref<512x128xf32, #tpu.memory_space<vmem>>, vector<512x128xf32>
    tpu.vector_store %arg3[%c0_7, %c0_8], %42 {strides = array<i32>} : memref<512x128xf32, #tpu.memory_space<vmem>>, vector<512x128xf32>,
    return
  }
  func.func @transform_0(%arg0: i32, %arg1: memref<1xi32, #tpu.memory_space<smem>>) -> (i32, i32) {
    %c0_i32 = arith.constant 0 : i32
    %c0_i32_0 = arith.constant 0 : i32
    return %arg0, %c0_i32 : i32, i32
  }
  func.func @transform_1(%arg0: i32, %arg1: memref<1xi32, #tpu.memory_space<smem>>) -> (i32, i32) {
    %c0_i32 = arith.constant 0 : i32
    %c0_i32_0 = arith.constant 0 : i32
    return %arg0, %c0_i32 : i32, i32
  }
}

</mosaic_0001>

<bundles_post_ra>
// kernel: tpu_custom_call.1
= control target key start
LH: loop header
LB: loop body
LE: loop exit
PB: predicated region body
PF: predicated region fallthrough
CT: control target
= control target key end

     0   :  { %s3893_s0 = inlined_call_operand.<no memory space> [shape: s32[1], index: 0, kind: input, shape index: {}]   ;;  %s3894_s1 = inlined_call_operand.hbm [shape: f32[1536,128], index: 1, kind: input, shape index: {}]   ;;  %s3895_s2 = inlined_call_operand.hbm [shape: f32[1536,128], index: 2, kind: output, shape index: {}]  }
   0x1   :  { %7 = sst [smem:[#allocation3]] %s3893_s0 }
   0x2   :  { %8 = vsyncpa [#allocation5], 0 }
   0x3   :  { %10 = vsyncpa [#allocation5 + $0x1], 0 }
   0x4   :  { %11 = vsyncpa [#allocation6], 0 }
   0x5   :  { %13 = vsyncpa [#allocation6 + $0x1], 0  ;;  %s2475_s11 = smov 0   ;;  %s2477_s12 = smov 0  }
   0x6   :  { %s2479_s13 = smov 0   ;;  %s2481_s14 = smov 0  }
   0x7 LB: > { %s2496_s0 = sadd.s32 4294967295, %s2449_s14   ;;  %s2026_s15 = sadd.s32 4294967294, %s2449_s14   ;;  %s2449_s14 = sphi %s2481_s14, %s4109_s14   ;;  %s2445_s13 = sphi %s2479_s13, %s4108_s13   ;;  %s2441_s12 = sphi %s2477_s12, %s4107_s12   ;;  %s2437_s11 = sphi %s2475_s11, %s4106_s11  }
   0x8   : > { %s2500_s16 = sadd.s32 1, %s2449_s14   ;;  %s26_s17 = sadd.s32 1, %s2445_s13 }
   0x9   : > { %s23_s18 = ssub.s32 %s2449_s14, %s2500_s16  ;;  %p33_p0 = scmp.ne.s32.totalorder %s2445_s13, %s2441_s12 }
   0xa   : > { %p24_p1 = scmp.eq.s32.totalorder %s23_s18, 0  ;;  %p34_p2 = scmp.eq.s32.totalorder %s2449_s14, 0 }
   0xb   : > { %p39_p3 = scmp.ne.s32.totalorder %s2441_s12, %s2437_s11  ;;  %p40_p4 = scmp.eq.s32.totalorder %s2496_s0, 0 }
   0xc   : > { %s2512_s19 = scalar_select %p24_p1, %s2445_s13, %s26_s17  }
   0xd   : > { %p2514_p5 = por %p34_p2, %p33_p0  ;;  %p2518_p6 = por %p40_p4, %p39_p3 }
   0xe   : > { %p63_p7 = scmp.eq.s32.totalorder %s2496_s0, 2  ;;  %p69_p8 = scmp.eq.s32.totalorder %s2026_s15, 2 }
   0xf   : > { %s3963_s21 = scalar_select %p2518_p6, 1, 0 }
  0x10   : > { %p2055_p9 = scmp.lt.s32.totalorder %s2449_s14, 3  ;;  %p2524_p10 = por %p63_p7, %p33_p0 }
  0x11   : > { %p2528_p11 = por %p69_p8, %p39_p3  ;;  %s89_s24 = sand.u32 1, %s2445_s13  }
  0x12   : > { %s3964_s22 = scalar_select %p2524_p10, 1, 0 }
  0x13   : > { %s3965_s23 = scalar_select %p2528_p11, 1, 0 }
  0x14   : > { %s2041_s25 = sshll.u32 %s2449_s14, 13  ;;  %s2029_s26 = sshll.u32 %s89_s24, 9 }
  0x15   : > { %s2537_s29 = scalar_lea.hbm %s3894_s1, %s2041_s25  ;;  %s93_s30 = scalar_lea.vmem [#allocation4], %s2029_s26 }
  0x16   : > { %s100_s3 = sshll.u32 %s93_s30, 4  ;;  %p2541_p12 = pnand %p2055_p9, %p2514_p5  ;;  %s2545_s3 = int_to_ptr.vmem [resolvable:$true] %s100_s3 }
  0x17   : > { %s2547_s5 = scalar_lea.sflag [#allocation5], %s89_s24  ;;  %s2357_s6 = scalar_lea.hbm %s2537_s29, 8192 }
  0x18   : > { %p2358_p13 = scmp.ne.s32.totalorder %s2537_s29, %s2357_s6  ;;  %p2359_p0 = pneg %p2541_p12 }
  0x19   : > { %s2362_s9 = scalar_lea.hbm %s3894_s1, 24576  ;;  %p2363_p3 = scmp.lt.s32.totalorder %s2537_s29, %s3894_s1 }
  0x1a   : > { %p2360_p1 = pnand %p2359_p0, %p2358_p13  ;;  %p2364_p4 = scmp.lt.s32.totalorder %s2362_s9, %s2357_s6 }
  0x1c   : > { %p2361_p2 = pneg %p2360_p1  ;;  %p2365_p5 = por %p2364_p4, %p2363_p3 }
  0x1e   : > { %p2366_p7 = pnand %p2365_p5, %p2361_p2 }
  0x20   : > { %2369 = shalt.err (!%p2366_p7)
}
  0x21   : > { %s2370_s17 = scalar_lea.vmem %s2545_s3, 8192  ;;  %s2451_s18 = smov [#allocation4]  }
  0x22   : > { %p2371_p8 = scmp.ne.s32.totalorder %s2545_s3, %s2370_s17  ;;  %s2375_s20 = sshll.u32 %s2451_s18, 4  ;;  %s2376_s20 = int_to_ptr.vmem [resolvable:$false] %s2375_s20 }
  0x23   : > { %s2377_s24 = scalar_lea.vmem %s2376_s20, 16384  ;;  %p2378_p1 = scmp.lt.s32.totalorder %s2545_s3, %s2376_s20 }
  0x24   : > { %p2373_p9 = pnand %p2371_p8, %p2359_p0  ;;  %p2379_p11 = scmp.lt.s32.totalorder %s2377_s24, %s2370_s17 }
  0x26   : > { %p2374_p13 = pneg %p2373_p9  ;;  %p2380_p10 = por %p2379_p11, %p2378_p1 }
  0x28   : > { %p2381_p6 = pnand %p2380_p10, %p2374_p13 }
  0x2a   : > { %2384 = shalt.err (!%p2381_p6)
}
  0x2b   : > { %s2452_s25 = smov 128   ;;  %s2453_s26 = smov 8  }
  0x2c   : > { %2050 = dma.hbm_to_vmem [thread:$0]  (!%p2541_p12), %s2537_s29, 8192, %s2545_s3, %s2547_s5, %s2452_s25, %s2452_s25, %s2453_s26  }
  0x2d   : > { %p2032_p0 = scmp.ge.s32.totalorder %s2449_s14, 1  ;;  %p108_p2 = scmp.lt.s32.totalorder %s2449_s14, 4 }
  0x2f   : > { %p109_p3 = pnand %p2032_p0, %p108_p2 }
  0x31   : > { %112 = sbr.rel (%p109_p3) target bundleno = 584 (0x248), region = 24 }
  0x36   : > { %s2571_s27 = sand.u32 1, %s2441_s12   ;;  %p3967_p6 = scmp.ne.s32.totalorder %s3963_s21, 0 }
  0x37   : > { %s2033_s28 = sshll.u32 %s2571_s27, 9  ;;  %s115_s30 = scalar_lea.sflag [#allocation5], %s2571_s27 }
  0x38   : > { %s2577_s6 = scalar_lea.vmem [#allocation4], %s2033_s28 }
  0x39   : > { %2428 = dma.done.wait (%p3967_p6), %s115_s30, 8192  }
  0x3a   : > { %2430 = vsyncadd (%p3967_p6), %s115_s30, 4294959104  ;;  %v2584_v0 = vld [vmem:[%s2577_s6] sm:$0xff]  ;;  %v2587_v1 = vld [vmem:[%s2577_s6 + $0x10] sm:$0xff]  ;;  %s2035_s21 = sshll.u32 %s2496_s0, 9  ;;  %s2835_s29 = sld [smem:[#allocation3]] }
  0x3b   : > { %203 = vmax.xlane.f32.xlu0 %v2584_v0  ;;  %207 = vmax.xlane.f32.xlu1 %v2587_v1  ;;  %v2592_v2 = vld [vmem:[%s2577_s6 + $0x8] sm:$0xff]  ;;  %v2595_v3 = vld [vmem:[%s2577_s6 + $0x18] sm:$0xff]  ;;  %v2600_v4 = vld [vmem:[%s2577_s6 + $0x20] sm:$0xff]  ;;  %s3414_s4 = scalar_lea.vmem [#allocation7], %s2033_s28  ;;  %s2042_s5 = sshll.u32 %s2496_s0, 13 }
  0x3c   : > { %v2603_v5 = vld [vmem:[%s2577_s6 + $0x28] sm:$0xff]  ;;  %v2608_v6 = vld [vmem:[%s2577_s6 + $0x30] sm:$0xff]  ;;  %v2611_v7 = vld [vmem:[%s2577_s6 + $0x38] sm:$0xff]  ;;  %s1953_s7 = sshll.u32 %s3414_s4, 4  ;;  %s3848_s10 = scalar_lea.hbm %s3895_s2, %s2042_s5  ;;  %s3850_s7 = int_to_ptr.vmem [resolvable:$true] %s1953_s7 }
  0x3d   : > { %v2616_v8 = vld [vmem:[%s2577_s6 + $0x40] sm:$0xff]  ;;  %v2619_v9 = vld [vmem:[%s2577_s6 + $0x48] sm:$0xff]  ;;  %v2624_v10 = vld [vmem:[%s2577_s6 + $0x50] sm:$0xff]  ;;  %s1940_s15 = scalar_lea.sflag [#allocation6], %s2571_s27  ;;  %s2385_s17 = scalar_lea.vmem %s3850_s7, 8192 }
  0x3e   : > { %v2627_v11 = vld [vmem:[%s2577_s6 + $0x58] sm:$0xff]  ;;  %v2632_v12 = vld [vmem:[%s2577_s6 + $0x60] sm:$0xff]  ;;  %v2635_v13 = vld [vmem:[%s2577_s6 + $0x68] sm:$0xff]  ;;  %p2386_p10 = scmp.ne.s32.totalorder %s3850_s7, %s2385_s17  ;;  %p4104_p11 = scmp.ne.s32.totalorder %s3964_s22, 0 }
  0x3f   : > { %205 = vmax.xlane.f32.xlu0 %v2592_v2  ;;  %209 = vmax.xlane.f32.xlu1 %v2595_v3  ;;  %v2640_v14 = vld [vmem:[%s2577_s6 + $0x70] sm:$0xff]  ;;  %v2643_v15 = vld [vmem:[%s2577_s6 + $0x78] sm:$0xff]  ;;  %v2648_v16 = vld [vmem:[%s2577_s6 + $0x80] sm:$0xff]  ;;  %s2454_s0 = smov [#allocation7]  }
  0x40   : > { %v2651_v17 = vld [vmem:[%s2577_s6 + $0x88] sm:$0xff]  ;;  %v2656_v18 = vld [vmem:[%s2577_s6 + $0x90] sm:$0xff]  ;;  %v2659_v19 = vld [vmem:[%s2577_s6 + $0x98] sm:$0xff]  ;;  %s1105_s3 = smul.u32 2654435761, %s2835_s29  ;;  %p2387_p12 = pnand %p2386_p10, %p4104_p11 }
  0x41   : > { %v2664_v20 = vld [vmem:[%s2577_s6 + $0xa0] sm:$0xff]  ;;  %v2667_v21 = vld [vmem:[%s2577_s6 + $0xa8] sm:$0xff]  ;;  %v2672_v22 = vld [vmem:[%s2577_s6 + $0xb0] sm:$0xff]  ;;  %s2389_s18 = sshll.u32 %s2454_s0, 4  ;;  %s2390_s18 = int_to_ptr.vmem [resolvable:$false] %s2389_s18 }
  0x42   : > { %v2675_v23 = vld [vmem:[%s2577_s6 + $0xb8] sm:$0xff]  ;;  %v2680_v24 = vld [vmem:[%s2577_s6 + $0xc0] sm:$0xff]  ;;  %v2683_v25 = vld [vmem:[%s2577_s6 + $0xc8] sm:$0xff]  ;;  %p2388_p4 = pneg %p2387_p12  ;;  %s2391_s20 = scalar_lea.vmem %s2390_s18, 16384 }
  0x43   : > { %211 = vmax.xlane.f32.xlu0 %v2600_v4  ;;  %213 = vmax.xlane.f32.xlu1 %v2603_v5  ;;  %v2688_v26 = vld [vmem:[%s2577_s6 + $0xd0] sm:$0xff]  ;;  %v2691_v27 = vld [vmem:[%s2577_s6 + $0xd8] sm:$0xff]  ;;  %v2696_v28 = vld [vmem:[%s2577_s6 + $0xe0] sm:$0xff]  ;;  %p2392_p5 = scmp.lt.s32.totalorder %s3850_s7, %s2390_s18  ;;  %p2393_p7 = scmp.lt.s32.totalorder %s2391_s20, %s2385_s17 }
  0x44   : > { %v2699_v29 = vld [vmem:[%s2577_s6 + $0xe8] sm:$0xff]  ;;  %v2704_v30 = vld [vmem:[%s2577_s6 + $0xf0] sm:$0xff]  ;;  %v2707_v31 = vld [vmem:[%s2577_s6 + $0xf8] sm:$0xff] }
  0x45   : > { %v2712_v32 = vld [vmem:[%s2577_s6 + $0x100] sm:$0xff]  ;;  %v2715_v33 = vld [vmem:[%s2577_s6 + $0x108] sm:$0xff]  ;;  %v2720_v34 = vld [vmem:[%s2577_s6 + $0x110] sm:$0xff]  ;;  %p2394_p8 = por %p2393_p7, %p2392_p5 }
  0x46   : > { %v2723_v35 = vld [vmem:[%s2577_s6 + $0x118] sm:$0xff]  ;;  %v2728_v36 = vld [vmem:[%s2577_s6 + $0x120] sm:$0xff]  ;;  %v2731_v37 = vld [vmem:[%s2577_s6 + $0x128] sm:$0xff] }
  0x47   : > { %215 = vmax.xlane.f32.xlu0 %v2608_v6  ;;  %217 = vmax.xlane.f32.xlu1 %v2611_v7  ;;  %v2736_v38 = vld [vmem:[%s2577_s6 + $0x130] sm:$0xff]  ;;  %v2739_v39 = vld [vmem:[%s2577_s6 + $0x138] sm:$0xff]  ;;  %v2744_v40 = vld [vmem:[%s2577_s6 + $0x140] sm:$0xff]  ;;  %p2395_p9 = pnand %p2394_p8, %p2388_p4 }
  0x48   : > { %v2747_v41 = vld [vmem:[%s2577_s6 + $0x148] sm:$0xff]  ;;  %v2752_v42 = vld [vmem:[%s2577_s6 + $0x150] sm:$0xff]  ;;  %v2755_v43 = vld [vmem:[%s2577_s6 + $0x158] sm:$0xff] }
  0x49   : > { %v2760_v44 = vld [vmem:[%s2577_s6 + $0x160] sm:$0xff]  ;;  %v2763_v45 = vld [vmem:[%s2577_s6 + $0x168] sm:$0xff]  ;;  %v2768_v46 = vld [vmem:[%s2577_s6 + $0x170] sm:$0xff] }
  0x4a   : > { %v2771_v47 = vld [vmem:[%s2577_s6 + $0x178] sm:$0xff]  ;;  %v2776_v48 = vld [vmem:[%s2577_s6 + $0x180] sm:$0xff]  ;;  %v2779_v49 = vld [vmem:[%s2577_s6 + $0x188] sm:$0xff] }
  0x4b   : > { %219 = vmax.xlane.f32.xlu0 %v2616_v8  ;;  %221 = vmax.xlane.f32.xlu1 %v2619_v9  ;;  %3968 = vst [vmem:[#allocation10_spill] sm:$0xff] %v2779_v49  ;;  %v2784_v50 = vld [vmem:[%s2577_s6 + $0x190] sm:$0xff]  ;;  %v2787_v51 = vld [vmem:[%s2577_s6 + $0x198] sm:$0xff]  ;;  %v2792_v52 = vld [vmem:[%s2577_s6 + $0x1a0] sm:$0xff] }
  0x4c   : > { %3969 = vst [vmem:[#allocation11_spill] sm:$0xff] %v2784_v50  ;;  %3970 = vst [vmem:[#allocation12_spill] sm:$0xff] %v2787_v51  ;;  %v2795_v53 = vld [vmem:[%s2577_s6 + $0x1a8] sm:$0xff]  ;;  %v2800_v54 = vld [vmem:[%s2577_s6 + $0x1b0] sm:$0xff] }
  0x4d   : > { %3971 = vst [vmem:[#allocation13_spill] sm:$0xff] %v2792_v52  ;;  %3972 = vst [vmem:[#allocation14_spill] sm:$0xff] %v2795_v53  ;;  %v2803_v55 = vld [vmem:[%s2577_s6 + $0x1b8] sm:$0xff]  ;;  %v195_v56 = vld [vmem:[%s2577_s6 + $0x1c0] sm:$0xff] }
  0x4e   : > { %3973 = vst [vmem:[#allocation15_spill] sm:$0xff] %v2800_v54  ;;  %3974 = vst [vmem:[#allocation16_spill] sm:$0xff] %v2803_v55  ;;  %v196_v57 = vld [vmem:[%s2577_s6 + $0x1c8] sm:$0xff]  ;;  %v197_v58 = vld [vmem:[%s2577_s6 + $0x1d0] sm:$0xff] }
  0x4f   : > { %223 = vmax.xlane.f32.xlu0 %v2624_v10  ;;  %225 = vmax.xlane.f32.xlu1 %v2627_v11  ;;  %v198_v59 = vld [vmem:[%s2577_s6 + $0x1d8] sm:$0xff]  ;;  %v199_v60 = vld [vmem:[%s2577_s6 + $0x1e0] sm:$0xff]  ;;  %v200_v61 = vld [vmem:[%s2577_s6 + $0x1e8] sm:$0xff] }
  0x50   : > { %v201_v62 = vld [vmem:[%s2577_s6 + $0x1f0] sm:$0xff]  ;;  %v202_v63 = vld [vmem:[%s2577_s6 + $0x1f8] sm:$0xff] }
  0x53   : > { %227 = vmax.xlane.f32.xlu0 %v2632_v12  ;;  %229 = vmax.xlane.f32.xlu1 %v2635_v13 }
  0x57   : > { %231 = vmax.xlane.f32.xlu0 %v2640_v14  ;;  %233 = vmax.xlane.f32.xlu1 %v2643_v15 }
  0x5b   : > { %235 = vmax.xlane.f32.xlu0 %v2648_v16  ;;  %237 = vmax.xlane.f32.xlu1 %v2651_v17 }
  0x5f   : > { %239 = vmax.xlane.f32.xlu0 %v2656_v18  ;;  %241 = vmax.xlane.f32.xlu1 %v2659_v19 }
  0x63   : > { %243 = vmax.xlane.f32.xlu0 %v2664_v20  ;;  %245 = vmax.xlane.f32.xlu1 %v2667_v21 }
  0x67   : > { %247 = vmax.xlane.f32.xlu0 %v2672_v22  ;;  %249 = vmax.xlane.f32.xlu1 %v2675_v23 }
  0x6b   : > { %251 = vmax.xlane.f32.xlu0 %v2680_v24  ;;  %253 = vmax.xlane.f32.xlu1 %v2683_v25 }
  0x6f   : > { %255 = vmax.xlane.f32.xlu0 %v2688_v26  ;;  %257 = vmax.xlane.f32.xlu1 %v2691_v27 }
  0x73   : > { %259 = vmax.xlane.f32.xlu0 %v2696_v28  ;;  %261 = vmax.xlane.f32.xlu1 %v2699_v29 }
  0x77   : > { %263 = vmax.xlane.f32.xlu0 %v2704_v30  ;;  %265 = vmax.xlane.f32.xlu1 %v2707_v31 }
  0x7b   : > { %267 = vmax.xlane.f32.xlu0 %v2712_v32  ;;  %269 = vmax.xlane.f32.xlu1 %v2715_v33 }
  0x7f   : > { %271 = vmax.xlane.f32.xlu0 %v2720_v34  ;;  %273 = vmax.xlane.f32.xlu1 %v2723_v35 }
  0x83   : > { %275 = vmax.xlane.f32.xlu0 %v2728_v36  ;;  %277 = vmax.xlane.f32.xlu1 %v2731_v37 }
  0x87   : > { %279 = vmax.xlane.f32.xlu0 %v2736_v38  ;;  %281 = vmax.xlane.f32.xlu1 %v2739_v39 }
  0x8b   : > { %283 = vmax.xlane.f32.xlu0 %v2744_v40  ;;  %285 = vmax.xlane.f32.xlu1 %v2747_v41 }
  0x8f   : > { %287 = vmax.xlane.f32.xlu0 %v2752_v42  ;;  %289 = vmax.xlane.f32.xlu1 %v2755_v43 }
  0x93   : > { %291 = vmax.xlane.f32.xlu0 %v2760_v44  ;;  %293 = vmax.xlane.f32.xlu1 %v2763_v45 }
  0x97   : > { %295 = vmax.xlane.f32.xlu0 %v2768_v46  ;;  %297 = vmax.xlane.f32.xlu1 %v2771_v47 }
  0x9b   : > { %299 = vmax.xlane.f32.xlu0 %v2776_v48  ;;  %301 = vmax.xlane.f32.xlu1 %v2779_v49 }
  0x9f   : > { %303 = vmax.xlane.f32.xlu0 %v2784_v50  ;;  %305 = vmax.xlane.f32.xlu1 %v2787_v51 }
  0xa3   : > { %307 = vmax.xlane.f32.xlu0 %v2792_v52  ;;  %309 = vmax.xlane.f32.xlu1 %v2795_v53 }
  0xa7   : > { %311 = vmax.xlane.f32.xlu0 %v2800_v54  ;;  %313 = vmax.xlane.f32.xlu1 %v2803_v55 }
  0xab   : > { %315 = vmax.xlane.f32.xlu0 %v195_v56  ;;  %317 = vmax.xlane.f32.xlu1 %v196_v57 }
  0xaf   : > { %319 = vmax.xlane.f32.xlu0 %v197_v58  ;;  %321 = vmax.xlane.f32.xlu1 %v198_v59 }
  0xb3   : > { %323 = vmax.xlane.f32.xlu0 %v199_v60  ;;  %325 = vmax.xlane.f32.xlu1 %v200_v61 }
  0xb7   : > { %327 = vmax.xlane.f32.xlu0 %v201_v62  ;;  %329 = vmax.xlane.f32.xlu1 %v202_v63 }
  0xc4   : > { %v204_v53 = vpop.xlane.xlu0 %203  ;;  %v208_v54 = vpop.xlane.xlu1 %207 }
  0xc5   : > { %v331_v55 = vsub.f32 %v2584_v0, %v204_v53  ;;  %v333_v52 = vsub.f32 %v2587_v1, %v208_v54 }
  0xc7   : > { %v395_v56 = vmul.f32 1.442695, %v331_v55  ;;  %v399_v57 = vmul.f32 1.442695, %v333_v52 }
  0xc8   : > { %v206_v51 = vpop.xlane.xlu0 %205  ;;  %v210_v50 = vpop.xlane.xlu1 %209 }
  0xc9   : > { %2093 = vpow2.f32 %v395_v56  ;;  %v332_v58 = vsub.f32 %v2592_v2, %v206_v51  ;;  %v334_v59 = vsub.f32 %v2595_v3, %v210_v50 }
  0xca   : > { %2095 = vpow2.f32 %v399_v57  ;;  %v843_v57 = vlaneseq }
  0xcb   : > { %v397_v60 = vmul.f32 1.442695, %v332_v58  ;;  %v401_v61 = vmul.f32 1.442695, %v334_v59 }
  0xcc   : > { %v212_v62 = vpop.xlane.xlu0 %211  ;;  %v214_v63 = vpop.xlane.xlu1 %213 }
  0xcd   : > { %2097 = vpow2.f32 %v397_v60  ;;  %v335_v49 = vsub.f32 %v2600_v4, %v212_v62  ;;  %v336_v0 = vsub.f32 %v2603_v5, %v214_v63  ;;  %v2833_v62 = vstv %s2035_s21 }
  0xce   : > { %2099 = vpow2.f32 %v401_v61  ;;  %v2831_v61 = vshrl.u32 %v843_v57, 7 }
  0xcf   : > { %v403_v1 = vmul.f32 1.442695, %v335_v49  ;;  %v405_v52 = vmul.f32 1.442695, %v336_v0 }
  0xd0   : > { %v216_v53 = vpop.xlane.xlu0 %215  ;;  %v218_v54 = vpop.xlane.xlu1 %217 }
  0xd1   : > { %2101 = vpow2.f32 %v403_v1  ;;  %v337_v2 = vsub.f32 %v2608_v6, %v216_v53  ;;  %v338_v3 = vsub.f32 %v2611_v7, %v218_v54 }
  0xd2   : > { %2103 = vpow2.f32 %v405_v52  ;;  %v912_v52 = vadd.s32 %v2833_v62, %v2831_v61 }
  0xd3   : > { %v407_v50 = vmul.f32 1.442695, %v337_v2  ;;  %v409_v51 = vmul.f32 1.442695, %v338_v3 }
  0xd4   : > { %v220_v55 = vpop.xlane.xlu0 %219  ;;  %v222_v56 = vpop.xlane.xlu1 %221 }
  0xd5   : > { %2105 = vpow2.f32 %v407_v50  ;;  %v339_v4 = vsub.f32 %v2616_v8, %v220_v55  ;;  %v340_v5 = vsub.f32 %v2619_v9, %v222_v56  ;;  %v846_v55 = vadd.s32 16, %v2831_v61 }
  0xd6   : > { %v2825_v49 = vpop.eup %2093  ;;  %2107 = vpow2.f32 %v409_v51  ;;  %v2852_v51 = vand.u32 127, %v843_v57 }
  0xd7   : > { %v411_v58 = vmul.f32 1.442695, %v339_v4  ;;  %523 = vadd.xlane.f32.xlu0 %v2825_v49  ;;  %v413_v6 = vmul.f32 1.442695, %v340_v5  ;;  %v2829_v7 = vpop.eup %2095  ;;  %v976_v5 = vmul.u32 128, %v912_v52 }
  0xd8   : > { %v224_v59 = vpop.xlane.xlu0 %223  ;;  %v226_v60 = vpop.xlane.xlu1 %225 }
  0xd9   : > { %2109 = vpow2.f32 %v411_v58  ;;  %v341_v8 = vsub.f32 %v2624_v10, %v224_v59  ;;  %v342_v9 = vsub.f32 %v2627_v11, %v226_v60  ;;  %v845_v10 = vadd.s32 8, %v2831_v61 }
  0xda   : > { %v2839_v63 = vpop.eup %2097  ;;  %2111 = vpow2.f32 %v413_v6 }
  0xdb   : > { %v415_v0 = vmul.f32 1.442695, %v341_v8  ;;  %527 = vadd.xlane.f32.xlu0 %v2829_v7  ;;  %525 = vadd.xlane.f32.xlu1 %v2839_v63  ;;  %v417_v1 = vmul.f32 1.442695, %v342_v9  ;;  %v2845_v53 = vpop.eup %2099  ;;  %v914_v8 = vadd.s32 %v2833_v62, %v846_v55 }
  0xdc   : > { %v228_v54 = vpop.xlane.xlu0 %227  ;;  %v230_v2 = vpop.xlane.xlu1 %229 }
  0xdd   : > { %2113 = vpow2.f32 %v415_v0  ;;  %v343_v11 = vsub.f32 %v2632_v12, %v228_v54  ;;  %v344_v3 = vsub.f32 %v2635_v13, %v230_v2  ;;  %v913_v13 = vadd.s32 %v2833_v62, %v845_v10 }
  0xde   : > { %v2850_v50 = vpop.eup %2101  ;;  %2115 = vpow2.f32 %v417_v1  ;;  %v1040_v1 = vadd.s32 %v976_v5, %v2852_v51  ;;  %v978_v55 = vmul.u32 128, %v914_v8 }
  0xdf   : > { %v419_v56 = vmul.f32 1.442695, %v343_v11  ;;  %529 = vadd.xlane.f32.xlu1 %v2845_v53  ;;  %531 = vadd.xlane.f32.xlu0 %v2850_v50  ;;  %v421_v4 = vmul.f32 1.442695, %v344_v3  ;;  %v2857_v58 = vpop.eup %2103 }
  0xe0   : > { %v232_v6 = vpop.xlane.xlu0 %231  ;;  %v234_v12 = vpop.xlane.xlu1 %233 }
  0xe1   : > { %2117 = vpow2.f32 %v419_v56  ;;  %v345_v57 = vsub.f32 %v2640_v14, %v232_v6  ;;  %v346_v59 = vsub.f32 %v2643_v15, %v234_v12  ;;  %v2871_v14 = vstv %s1105_s3 }
  0xe2   : > { %v2863_v60 = vpop.eup %2105  ;;  %2119 = vpow2.f32 %v421_v4  ;;  %v977_v15 = vmul.u32 128, %v913_v13  ;;  %v1107_v5 = vxor.u32 %v2871_v14, %v1040_v1 }
  0xe3   : > { %v423_v9 = vmul.f32 1.442695, %v345_v57  ;;  %533 = vadd.xlane.f32.xlu1 %v2857_v58  ;;  %535 = vadd.xlane.f32.xlu0 %v2863_v60  ;;  %v425_v0 = vmul.f32 1.442695, %v346_v59  ;;  %v2869_v52 = vpop.eup %2107  ;;  %v847_v59 = vadd.s32 24, %v2831_v61 }
  0xe4   : > { %v236_v54 = vpop.xlane.xlu0 %235  ;;  %v238_v2 = vpop.xlane.xlu1 %237 }
  0xe5   : > { %2121 = vpow2.f32 %v423_v9  ;;  %v347_v10 = vsub.f32 %v2648_v16, %v236_v54  ;;  %v348_v11 = vsub.f32 %v2651_v17, %v238_v2  ;;  %v1041_v16 = vadd.s32 %v977_v15, %v2852_v51 }
  0xe6   : > { %v2875_v3 = vpop.eup %2109  ;;  %2123 = vpow2.f32 %v425_v0  ;;  %v1042_v9 = vadd.s32 %v978_v55, %v2852_v51  ;;  %v1171_v54 = vshrl.u32 %v1107_v5, 16  ;;  %v915_v55 = vadd.s32 %v2833_v62, %v847_v59 }
  0xe7   : > { %v427_v56 = vmul.f32 1.442695, %v347_v10  ;;  %537 = vadd.xlane.f32.xlu1 %v2869_v52  ;;  %539 = vadd.xlane.f32.xlu0 %v2875_v3  ;;  %v429_v4 = vmul.f32 1.442695, %v348_v11  ;;  %v2880_v6 = vpop.eup %2111 }
  0xe8   : > { %v240_v12 = vpop.xlane.xlu0 %239  ;;  %v242_v13 = vpop.xlane.xlu1 %241 }
  0xe9   : > { %2125 = vpow2.f32 %v427_v56  ;;  %v349_v17 = vsub.f32 %v2656_v18, %v240_v12  ;;  %v350_v57 = vsub.f32 %v2659_v19, %v242_v13  ;;  %v1108_v19 = vxor.u32 %v2871_v14, %v1041_v16 }
  0xea   : > { %v2886_v8 = vpop.eup %2113  ;;  %2127 = vpow2.f32 %v429_v4  ;;  %v1109_v4 = vxor.u32 %v2871_v14, %v1042_v9  ;;  %v848_v12 = vadd.s32 32, %v2831_v61 }
  0xeb   : > { %3975 = vst [vmem:[#allocation17_spill] sm:$0xff] %v2886_v8  ;;  %v431_v0 = vmul.f32 1.442695, %v349_v17  ;;  %541 = vadd.xlane.f32.xlu1 %v2880_v6  ;;  %543 = vadd.xlane.f32.xlu0 %v2886_v8  ;;  %v433_v1 = vmul.f32 1.442695, %v350_v57  ;;  %v2891_v2 = vpop.eup %2115  ;;  %v1235_v17 = vxor.u32 %v1171_v54, %v1107_v5 }
  0xec   : > { %3976 = vst [vmem:[#allocation18_spill] sm:$0xff] %v2891_v2  ;;  %v244_v15 = vpop.xlane.xlu0 %243  ;;  %v246_v18 = vpop.xlane.xlu1 %245 }
  0xed   : > { %2129 = vpow2.f32 %v431_v0  ;;  %v351_v10 = vsub.f32 %v2664_v20, %v244_v15  ;;  %v352_v11 = vsub.f32 %v2667_v21, %v246_v18  ;;  %v1172_v0 = vshrl.u32 %v1108_v19, 16 }
  0xee   : > { %v2897_v56 = vpop.eup %2117  ;;  %2131 = vpow2.f32 %v433_v1  ;;  %v979_v15 = vmul.u32 128, %v915_v55  ;;  %v1173_v1 = vshrl.u32 %v1109_v4, 16  ;;  %v1299_v54 = vmul.u32 2146121005, %v1235_v17 }
  0xef   : > { %3977 = vst [vmem:[#allocation19_spill] sm:$0xff] %v2897_v56  ;;  %v435_v13 = vmul.f32 1.442695, %v351_v10  ;;  %545 = vadd.xlane.f32.xlu1 %v2891_v2  ;;  %547 = vadd.xlane.f32.xlu0 %v2897_v56  ;;  %v437_v16 = vmul.f32 1.442695, %v352_v11  ;;  %v2903_v57 = vpop.eup %2119  ;;  %v916_v10 = vadd.s32 %v2833_v62, %v848_v12  ;;  %v850_v17 = vadd.s32 48, %v2831_v61 }
  0xf0   : > { %3978 = vst [vmem:[#allocation20_spill] sm:$0xff] %v2903_v57  ;;  %v248_v20 = vpop.xlane.xlu0 %247  ;;  %v250_v21 = vpop.xlane.xlu1 %249  ;;  %v872_v2 = vadd.s32 224, %v2831_v61 }
  0xf1   : > { %2133 = vpow2.f32 %v435_v13  ;;  %v353_v59 = vsub.f32 %v2672_v22, %v248_v20  ;;  %v354_v9 = vsub.f32 %v2675_v23, %v250_v21  ;;  %v1236_v20 = vxor.u32 %v1172_v0, %v1108_v19 }
  0xf2   : > { %v2907_v18 = vpop.eup %2121  ;;  %2135 = vpow2.f32 %v437_v16  ;;  %v849_v23 = vadd.s32 40, %v2831_v61  ;;  %v1043_v16 = vadd.s32 %v979_v15, %v2852_v51 }
  0xf3   : > { %3979 = vst [vmem:[#allocation21_spill] sm:$0xff] %v2907_v18  ;;  %v439_v56 = vmul.f32 1.442695, %v353_v59  ;;  %549 = vadd.xlane.f32.xlu1 %v2903_v57  ;;  %551 = vadd.xlane.f32.xlu0 %v2907_v18  ;;  %v441_v5 = vmul.f32 1.442695, %v354_v9  ;;  %v2912_v11 = vpop.eup %2123  ;;  %v1237_v59 = vxor.u32 %v1173_v1, %v1109_v4  ;;  %v980_v18 = vmul.u32 128, %v916_v10 }
  0xf4   : > { %3980 = vst [vmem:[#allocation22_spill] sm:$0xff] %v2912_v11  ;;  %v252_v13 = vpop.xlane.xlu0 %251  ;;  %v254_v22 = vpop.xlane.xlu1 %253  ;;  %v917_v15 = vadd.s32 %v2833_v62, %v849_v23  ;;  %v1110_v10 = vxor.u32 %v2871_v14, %v1043_v16 }
  0xf5   : > { %2137 = vpow2.f32 %v439_v56  ;;  %v355_v55 = vsub.f32 %v2680_v24, %v252_v13  ;;  %v356_v12 = vsub.f32 %v2683_v25, %v254_v22  ;;  %v1363_v56 = vshrl.u32 %v1299_v54, 15 }
  0xf6   : > { %v2918_v21 = vpop.eup %2125  ;;  %2139 = vpow2.f32 %v441_v5  ;;  %v1300_v13 = vmul.u32 2146121005, %v1236_v20  ;;  %v1301_v22 = vmul.u32 2146121005, %v1237_v59  ;;  %v851_v59 = vadd.s32 56, %v2831_v61 }
  0xf7   : > { %3981 = vst [vmem:[#allocation23_spill] sm:$0xff] %v2918_v21  ;;  %v443_v9 = vmul.f32 1.442695, %v355_v55  ;;  %553 = vadd.xlane.f32.xlu1 %v2912_v11  ;;  %555 = vadd.xlane.f32.xlu0 %v2918_v21  ;;  %v445_v19 = vmul.f32 1.442695, %v356_v12  ;;  %v2923_v0 = vpop.eup %2127  ;;  %v1044_v55 = vadd.s32 %v980_v18, %v2852_v51  ;;  %v918_v12 = vadd.s32 %v2833_v62, %v850_v17 }
  0xf8   : > { %3982 = vst [vmem:[#allocation24_spill] sm:$0xff] %v2923_v0  ;;  %v256_v24 = vpop.xlane.xlu0 %255  ;;  %v258_v25 = vpop.xlane.xlu1 %257  ;;  %v2935_v23 = vxor.u32 %v1363_v56, %v1299_v54 }
  0xf9   : > { %2141 = vpow2.f32 %v443_v9  ;;  %v357_v4 = vsub.f32 %v2688_v26, %v256_v24  ;;  %v358_v1 = vsub.f32 %v2691_v27, %v258_v25  ;;  %v1364_v9 = vshrl.u32 %v1300_v13, 15 }
  0xfa   : > { %v2929_v5 = vpop.eup %2129  ;;  %2143 = vpow2.f32 %v445_v19  ;;  %v981_v24 = vmul.u32 128, %v917_v15  ;;  %v1174_v19 = vshrl.u32 %v1110_v10, 16  ;;  %v1111_v54 = vxor.u32 %v2871_v14, %v1044_v55 }
  0xfb   : > { %3983 = vst [vmem:[#allocation25_spill] sm:$0xff] %v2929_v5  ;;  %v447_v21 = vmul.f32 1.442695, %v357_v4  ;;  %557 = vadd.xlane.f32.xlu1 %v2923_v0  ;;  %559 = vadd.xlane.f32.xlu0 %v2929_v5  ;;  %v449_v20 = vmul.f32 1.442695, %v358_v1  ;;  %v2937_v26 = vpop.eup %2131  ;;  %v1365_v4 = vshrl.u32 %v1301_v22, 15 }
  0xfc   : > { %3984 = vst [vmem:[#allocation26_spill] sm:$0xff] %v2937_v26  ;;  %v260_v27 = vpop.xlane.xlu0 %259  ;;  %v262_v16 = vpop.xlane.xlu1 %261  ;;  %v982_v56 = vmul.u32 128, %v918_v12  ;;  %v852_v1 = vadd.s32 64, %v2831_v61  ;;  %v1045_v55 = vadd.s32 %v981_v24, %v2852_v51  ;;  %v919_v12 = vadd.s32 %v2833_v62, %v851_v59 }
  0xfd   : > { %2145 = vpow2.f32 %v447_v21  ;;  %v359_v18 = vsub.f32 %v2696_v28, %v260_v27  ;;  %v360_v17 = vsub.f32 %v2699_v29, %v262_v16  ;;  %v1491_v28 = vmul.u32 2221713035, %v2935_v23 }
  0xfe   : > { %v2942_v25 = vpop.eup %2133  ;;  %2147 = vpow2.f32 %v449_v20  ;;  %v2951_v16 = vxor.u32 %v1364_v9, %v1300_v13  ;;  %v2961_v23 = vxor.u32 %v1365_v4, %v1301_v22  ;;  %v1046_v0 = vadd.s32 %v982_v56, %v2852_v51 }
  0xff   : > { %3985 = vst [vmem:[#allocation27_spill] sm:$0xff] %v2942_v25  ;;  %v451_v5 = vmul.f32 1.442695, %v359_v18  ;;  %561 = vadd.xlane.f32.xlu1 %v2937_v26  ;;  %563 = vadd.xlane.f32.xlu0 %v2942_v25  ;;  %v453_v21 = vmul.f32 1.442695, %v360_v17  ;;  %v2949_v15 = vpop.eup %2135  ;;  %v2957_v26 = vxor.u32 %v1174_v19, %v1110_v10  ;;  %v1175_v25 = vshrl.u32 %v1111_v54, 16 }
 0x100   : > { %3986 = vst [vmem:[#allocation28_spill] sm:$0xff] %v2949_v15  ;;  %v264_v29 = vpop.xlane.xlu0 %263  ;;  %v266_v27 = vpop.xlane.xlu1 %265  ;;  %v920_v13 = vadd.s32 %v2833_v62, %v852_v1  ;;  %v1492_v22 = vmul.u32 2221713035, %v2951_v16  ;;  %v1112_v59 = vxor.u32 %v2871_v14, %v1045_v55  ;;  %v983_v19 = vmul.u32 128, %v919_v12 }
 0x101   : > { %2149 = vpow2.f32 %v451_v5  ;;  %v361_v20 = vsub.f32 %v2704_v30, %v264_v29  ;;  %v362_v18 = vsub.f32 %v2707_v31, %v266_v27  ;;  %v1555_v5 = vshrl.u32 %v1491_v28, 16 }
 0x102   : > { %v2959_v17 = vpop.eup %2137  ;;  %2151 = vpow2.f32 %v453_v21  ;;  %v853_v4 = vadd.s32 72, %v2831_v61  ;;  %v1302_v21 = vmul.u32 2146121005, %v2957_v26  ;;  %v1113_v16 = vxor.u32 %v2871_v14, %v1046_v0 }
 0x103   : > { %3987 = vst [vmem:[#allocation29_spill] sm:$0xff] %v2959_v17  ;;  %v455_v9 = vmul.f32 1.442695, %v361_v20  ;;  %565 = vadd.xlane.f32.xlu1 %v2949_v15  ;;  %567 = vadd.xlane.f32.xlu0 %v2959_v17  ;;  %v457_v30 = vmul.f32 1.442695, %v362_v18  ;;  %v2967_v31 = vpop.eup %2139  ;;  %v2978_v20 = vxor.u32 %v1175_v25, %v1111_v54  ;;  %v984_v18 = vmul.u32 128, %v920_v13 }
 0x104   : > { %3988 = vst [vmem:[#allocation30_spill] sm:$0xff] %v2967_v31  ;;  %v268_v10 = vpop.xlane.xlu0 %267  ;;  %v270_v24 = vpop.xlane.xlu1 %269  ;;  %v2983_v12 = vxor.u32 %v1555_v5, %v1491_v28  ;;  %v1047_v25 = vadd.s32 %v983_v19, %v2852_v51  ;;  %v921_v54 = vadd.s32 %v2833_v62, %v853_v4  ;;  %v854_v0 = vadd.s32 80, %v2831_v61 }
 0x105   : > { %2153 = vpow2.f32 %v455_v9  ;;  %v363_v56 = vsub.f32 %v2712_v32, %v268_v10  ;;  %v364_v1 = vsub.f32 %v2715_v33, %v270_v24  ;;  %v1176_v10 = vshrl.u32 %v1112_v59, 16 }
 0x106   : > { %v2975_v29 = vpop.eup %2141  ;;  %2155 = vpow2.f32 %v457_v30  ;;  %v1366_v24 = vshrl.u32 %v1302_v21, 15  ;;  %v1556_v28 = vshrl.u32 %v1492_v22, 16  ;;  %v1303_v5 = vmul.u32 2146121005, %v2978_v20 }
 0x107   : > { %3989 = vst [vmem:[#allocation31_spill] sm:$0xff] %v2975_v29  ;;  %v459_v55 = vmul.f32 1.442695, %v363_v56  ;;  %569 = vadd.xlane.f32.xlu1 %v2967_v31  ;;  %571 = vadd.xlane.f32.xlu0 %v2975_v29  ;;  %v461_v32 = vmul.f32 1.442695, %v364_v1  ;;  %v2985_v33 = vpop.eup %2143  ;;  %v1177_v1 = vshrl.u32 %v1113_v16, 16  ;;  %v1048_v27 = vadd.s32 %v984_v18, %v2852_v51 }
 0x108   : > { %3990 = vst [vmem:[#allocation32_spill] sm:$0xff] %v2985_v33  ;;  %v272_v26 = vpop.xlane.xlu0 %271  ;;  %v274_v9 = vpop.xlane.xlu1 %273  ;;  %v3002_v29 = vxor.u32 %v1176_v10, %v1112_v59  ;;  %v1114_v20 = vxor.u32 %v2871_v14, %v1047_v25  ;;  %v985_v31 = vmul.u32 128, %v921_v54  ;;  %v922_v18 = vadd.s32 %v2833_v62, %v854_v0 }
 0x109   : > { %2157 = vpow2.f32 %v459_v55  ;;  %v365_v13 = vsub.f32 %v2720_v34, %v272_v26  ;;  %v366_v30 = vsub.f32 %v2723_v35, %v274_v9  ;;  %v3992_v34 = vmul.u32 2221713035, %v2961_v23 }
 0x10a   : > { %v2992_v56 = vpop.eup %2145  ;;  %2159 = vpow2.f32 %v461_v32  ;;  %v3014_v17 = vxor.u32 %v1177_v1, %v1113_v16  ;;  %v1115_v59 = vxor.u32 %v2871_v14, %v1048_v27  ;;  %v986_v25 = vmul.u32 128, %v922_v18 }
 0x10b   : > { %3991 = vst [vmem:[#allocation33_spill] sm:$0xff] %v2992_v56  ;;  %v463_v19 = vmul.f32 1.442695, %v365_v13  ;;  %573 = vadd.xlane.f32.xlu1 %v2985_v33  ;;  %575 = vadd.xlane.f32.xlu0 %v2992_v56  ;;  %v465_v4 = vmul.f32 1.442695, %v366_v30  ;;  %v1557_v55 = vshrl.u32 %v3992_v34, 16  ;;  %v3000_v35 = vpop.eup %2147  ;;  %v3008_v30 = vxor.u32 %v1366_v24, %v1302_v21 }
 0x10c   : > { %3993 = vst [vmem:[#allocation34_spill] sm:$0xff] %v3000_v35  ;;  %v276_v26 = vpop.xlane.xlu0 %275  ;;  %v278_v9 = vpop.xlane.xlu1 %277  ;;  %v3012_v34 = vxor.u32 %v1556_v28, %v1492_v22  ;;  %v1367_v33 = vshrl.u32 %v1303_v5, 15  ;;  %v1304_v22 = vmul.u32 2146121005, %v3002_v29  ;;  %v1178_v0 = vshrl.u32 %v1114_v20, 16 }
 0x10d   : > { %2161 = vpow2.f32 %v463_v19  ;;  %v367_v32 = vsub.f32 %v2728_v36, %v276_v26  ;;  %v368_v13 = vsub.f32 %v2731_v37, %v278_v9  ;;  %v1049_v16 = vadd.s32 %v985_v31, %v2852_v51 }
 0x10e   : > { %v3010_v56 = vpop.eup %2149  ;;  %2163 = vpow2.f32 %v465_v4  ;;  %v855_v24 = vadd.s32 88, %v2831_v61  ;;  %v1494_v1 = vmul.u32 2221713035, %v3008_v30  ;;  %v3997_v4 = vmul.u32 2221713035, %v2961_v23 }
 0x10f   : > { %3994 = vst [vmem:[#allocation35_spill] sm:$0xff] %v3010_v56  ;;  %v467_v10 = vmul.f32 1.442695, %v367_v32  ;;  %577 = vadd.xlane.f32.xlu1 %v3000_v35  ;;  %579 = vadd.xlane.f32.xlu0 %v3010_v56  ;;  %v469_v36 = vmul.f32 1.442695, %v368_v13  ;;  %v3019_v37 = vpop.eup %2151  ;;  %v3033_v9 = vxor.u32 %v1367_v33, %v1303_v5  ;;  %v1050_v31 = vadd.s32 %v986_v25, %v2852_v51 }
 0x110   : > { %3995 = vst [vmem:[#allocation36_spill] sm:$0xff] %v3019_v37  ;;  %v280_v21 = vpop.xlane.xlu0 %279  ;;  %v282_v54 = vpop.xlane.xlu1 %281  ;;  %v3031_v26 = vxor.u32 %v1557_v55, %v3997_v4  ;;  %v1305_v29 = vmul.u32 2146121005, %v3014_v17  ;;  %v1368_v55 = vshrl.u32 %v1304_v22, 15  ;;  %v3041_v30 = vxor.u32 %v1178_v0, %v1114_v20 }
 0x111   : > { %2165 = vpow2.f32 %v467_v10  ;;  %v369_v27 = vsub.f32 %v2736_v38, %v280_v21  ;;  %v370_v28 = vsub.f32 %v2739_v39, %v282_v54  ;;  %v1179_v39 = vshrl.u32 %v1115_v59, 16 }
 0x112   : > { %v3027_v19 = vpop.eup %2153  ;;  %2167 = vpow2.f32 %v469_v36  ;;  %v1116_v33 = vxor.u32 %v2871_v14, %v1049_v16  ;;  %v923_v17 = vadd.s32 %v2833_v62, %v855_v24  ;;  %v1558_v36 = vshrl.u32 %v1494_v1, 16 }
 0x113   : > { %3996 = vst [vmem:[#allocation37_spill] sm:$0xff] %v3027_v19  ;;  %v471_v18 = vmul.f32 1.442695, %v369_v27  ;;  %581 = vadd.xlane.f32.xlu1 %v3019_v37  ;;  %583 = vadd.xlane.f32.xlu0 %v3027_v19  ;;  %v473_v38 = vmul.f32 1.442695, %v370_v28  ;;  %v3039_v32 = vpop.eup %2155  ;;  %v1369_v54 = vshrl.u32 %v1305_v29, 15  ;;  %v1117_v27 = vxor.u32 %v2871_v14, %v1050_v31 }
 0x114   : > { %3998 = vst [vmem:[#allocation38_spill] sm:$0xff] %v3039_v32  ;;  %v284_v13 = vpop.xlane.xlu0 %283  ;;  %v286_v23 = vpop.xlane.xlu1 %285  ;;  %v1495_v21 = vmul.u32 2221713035, %v3033_v9  ;;  %v856_v20 = vadd.s32 96, %v2831_v61  ;;  %v3058_v4 = vxor.u32 %v1368_v55, %v1304_v22  ;;  %v1306_v9 = vmul.u32 2146121005, %v3041_v30 }
 0x115   : > { %2169 = vpow2.f32 %v471_v18  ;;  %v371_v5 = vsub.f32 %v2744_v40, %v284_v13  ;;  %v372_v10 = vsub.f32 %v2747_v41, %v286_v23  ;;  %v3054_v40 = vxor.u32 %v1179_v39, %v1115_v59 }
 0x116   : > { %v3047_v25 = vpop.eup %2157  ;;  %2171 = vpow2.f32 %v473_v38  ;;  %v1180_v31 = vshrl.u32 %v1116_v33, 16  ;;  %v987_v18 = vmul.u32 128, %v923_v17  ;;  %v3063_v23 = vxor.u32 %v1558_v36, %v1494_v1 }
 0x117   : > { %3999 = vst [vmem:[#allocation39_spill] sm:$0xff] %v3047_v25  ;;  %v475_v0 = vmul.f32 1.442695, %v371_v5  ;;  %585 = vadd.xlane.f32.xlu1 %v3039_v32  ;;  %587 = vadd.xlane.f32.xlu0 %v3047_v25  ;;  %v477_v16 = vmul.f32 1.442695, %v372_v10  ;;  %v3056_v41 = vpop.eup %2159  ;;  %v1559_v59 = vshrl.u32 %v1495_v21, 16  ;;  %v3067_v39 = vxor.u32 %v1369_v54, %v1305_v29 }
 0x118   : > { %4000 = vst [vmem:[#allocation40_spill] sm:$0xff] %v3056_v41  ;;  %v288_v24 = vpop.xlane.xlu0 %287  ;;  %v290_v28 = vpop.xlane.xlu1 %289  ;;  %v1181_v10 = vshrl.u32 %v1117_v27, 16  ;;  %v924_v22 = vadd.s32 %v2833_v62, %v856_v20  ;;  %v1496_v36 = vmul.u32 2221713035, %v3058_v4  ;;  %v1370_v29 = vshrl.u32 %v1306_v9, 15  ;;  %v2356_v25 = vld [vmem:[%s2577_s6 + $0x1f8] sm:$0xff] }
 0x119   : > { %2173 = vpow2.f32 %v475_v0  ;;  %v373_v38 = vsub.f32 %v2752_v42, %v288_v24  ;;  %v374_v13 = vsub.f32 %v2755_v43, %v290_v28  ;;  %v1307_v42 = vmul.u32 2146121005, %v3054_v40 }
 0x11a   : > { %v3065_v5 = vpop.eup %2161  ;;  %2175 = vpow2.f32 %v477_v16  ;;  %v3076_v54 = vxor.u32 %v1180_v31, %v1116_v33  ;;  %v1051_v20 = vadd.s32 %v987_v18, %v2852_v51  ;;  %v857_v24 = vadd.s32 104, %v2831_v61 }
 0x11b   : > { %4001 = vst [vmem:[#allocation41_spill] sm:$0xff] %v3065_v5  ;;  %v479_v55 = vmul.f32 1.442695, %v373_v38  ;;  %589 = vadd.xlane.f32.xlu1 %v3056_v41  ;;  %591 = vadd.xlane.f32.xlu0 %v3065_v5  ;;  %v481_v30 = vmul.f32 1.442695, %v374_v13  ;;  %v3073_v43 = vpop.eup %2163  ;;  %v3084_v40 = vxor.u32 %v1559_v59, %v1495_v21  ;;  %v3087_v13 = vxor.u32 %v1181_v10, %v1117_v27 }
 0x11c   : > { %4002 = vst [vmem:[#allocation42_spill] sm:$0xff] %v3073_v43  ;;  %v292_v1 = vpop.xlane.xlu0 %291  ;;  %v294_v17 = vpop.xlane.xlu1 %293  ;;  %v1497_v38 = vmul.u32 2221713035, %v3067_v39  ;;  %v988_v4 = vmul.u32 128, %v924_v22  ;;  %v1371_v31 = vshrl.u32 %v1307_v42, 15  ;;  %v3093_v21 = vxor.u32 %v1370_v29, %v1306_v9 }
 0x11d   : > { %2177 = vpow2.f32 %v479_v55  ;;  %v375_v0 = vsub.f32 %v2760_v44, %v292_v1  ;;  %v376_v16 = vsub.f32 %v2763_v45, %v294_v17  ;;  %v1560_v1 = vshrl.u32 %v1496_v36, 16 }
 0x11e   : > { %v3082_v28 = vpop.eup %2165  ;;  %2179 = vpow2.f32 %v481_v30  ;;  %v1308_v59 = vmul.u32 2146121005, %v3076_v54  ;;  %v1118_v27 = vxor.u32 %v2871_v14, %v1051_v20  ;;  %v925_v22 = vadd.s32 %v2833_v62, %v857_v24 }
 0x11f   : > { %4003 = vst [vmem:[#allocation43_spill] sm:$0xff] %v3082_v28  ;;  %v483_v33 = vmul.f32 1.442695, %v375_v0  ;;  %593 = vadd.xlane.f32.xlu1 %v3073_v43  ;;  %595 = vadd.xlane.f32.xlu0 %v3082_v28  ;;  %v485_v44 = vmul.f32 1.442695, %v376_v16  ;;  %v3091_v45 = vpop.eup %2167  ;;  %v1561_v17 = vshrl.u32 %v1497_v38, 16  ;;  %v1052_v16 = vadd.s32 %v988_v4, %v2852_v51 }
 0x120   : > { %4004 = vst [vmem:[#allocation44_spill] sm:$0xff] %v3091_v45  ;;  %v296_v18 = vpop.xlane.xlu0 %295  ;;  %v298_v55 = vpop.xlane.xlu1 %297  ;;  %v1309_v0 = vmul.u32 2146121005, %v3087_v13  ;;  %v858_v9 = vadd.s32 112, %v2831_v61  ;;  %v3107_v54 = vxor.u32 %v1371_v31, %v1307_v42  ;;  %v1498_v13 = vmul.u32 2221713035, %v3093_v21 }
 0x121   : > { %2181 = vpow2.f32 %v483_v33  ;;  %v377_v39 = vsub.f32 %v2768_v46, %v296_v18  ;;  %v378_v10 = vsub.f32 %v2771_v47, %v298_v55  ;;  %v3111_v33 = vxor.u32 %v1560_v1, %v1496_v36  ;;  %v4007_v55 = vld [vmem:[#allocation10_spill] sm:$0xff] }
 0x122   : > { %v3100_v30 = vpop.eup %2169  ;;  %2183 = vpow2.f32 %v485_v44  ;;  %v1372_v4 = vshrl.u32 %v1308_v59, 15  ;;  %v1182_v18 = vshrl.u32 %v1118_v27, 16  ;;  %v3118_v42 = vxor.u32 %v1561_v17, %v1497_v38 }
 0x123   : > { %4005 = vst [vmem:[#allocation45_spill] sm:$0xff] %v3100_v30  ;;  %v487_v29 = vmul.f32 1.442695, %v377_v39  ;;  %597 = vadd.xlane.f32.xlu1 %v3091_v45  ;;  %599 = vadd.xlane.f32.xlu0 %v3100_v30  ;;  %v489_v46 = vmul.f32 1.442695, %v378_v10  ;;  %v3109_v47 = vpop.eup %2171  ;;  %v989_v45 = vmul.u32 128, %v925_v22  ;;  %v1119_v10 = vxor.u32 %v2871_v14, %v1052_v16 }
 0x124   : > { %4006 = vst [vmem:[#allocation46_spill] sm:$0xff] %v3109_v47  ;;  %v300_v20 = vpop.xlane.xlu0 %299  ;;  %v302_v24 = vpop.xlane.xlu1 %301  ;;  %v1373_v31 = vshrl.u32 %v1309_v0, 15  ;;  %v926_v36 = vadd.s32 %v2833_v62, %v858_v9  ;;  %v1562_v38 = vshrl.u32 %v1498_v13, 16  ;;  %v3127_v17 = vxor.u32 %v1372_v4, %v1308_v59  ;;  %v4010_v9 = vld [vmem:[#allocation11_spill] sm:$0xff] }
 0x125   : > { %2185 = vpow2.f32 %v487_v29  ;;  %v379_v44 = vsub.f32 %v2776_v48, %v300_v20  ;;  %v380_v39 = vsub.f32 %v4007_v55, %v302_v24  ;;  %v1499_v48 = vmul.u32 2221713035, %v3107_v54 }
 0x126   : > { %v3116_v30 = vpop.eup %2173  ;;  %2187 = vpow2.f32 %v489_v46  ;;  %v3129_v24 = vxor.u32 %v1182_v18, %v1118_v27  ;;  %v859_v16 = vadd.s32 120, %v2831_v61  ;;  %v3137_v54 = vxor.u32 %v1373_v31, %v1309_v0 }
 0x127   : > { %4008 = vst [vmem:[#allocation10_spill] sm:$0xff] %v3116_v30  ;;  %v491_v1 = vmul.f32 1.442695, %v379_v44  ;;  %601 = vadd.xlane.f32.xlu1 %v3109_v47  ;;  %603 = vadd.xlane.f32.xlu0 %v3116_v30  ;;  %v493_v21 = vmul.f32 1.442695, %v380_v39  ;;  %v3125_v29 = vpop.eup %2175  ;;  %v4011_v44 = vld [vmem:[#allocation12_spill] sm:$0xff]  ;;  %v1053_v39 = vadd.s32 %v989_v45, %v2852_v51 }
 0x128   : > { %4009 = vst [vmem:[#allocation47_spill] sm:$0xff] %v3125_v29  ;;  %v304_v22 = vpop.xlane.xlu0 %303  ;;  %v306_v20 = vpop.xlane.xlu1 %305  ;;  %v1183_v47 = vshrl.u32 %v1119_v10, 16  ;;  %v990_v28 = vmul.u32 128, %v926_v36  ;;  %v860_v59 = vadd.s32 128, %v2831_v61  ;;  %v1563_v18 = vshrl.u32 %v1499_v48, 16 }
 0x129   : > { %2189 = vpow2.f32 %v491_v1  ;;  %v381_v46 = vsub.f32 %v4010_v9, %v304_v22  ;;  %v382_v55 = vsub.f32 %v4011_v44, %v306_v20  ;;  %v3144_v20 = vxor.u32 %v1562_v38, %v1498_v13 }
 0x12a   : > { %v3135_v30 = vpop.eup %2177  ;;  %2191 = vpow2.f32 %v493_v21  ;;  %v1500_v0 = vmul.u32 2221713035, %v3127_v17  ;;  %v1310_v31 = vmul.u32 2146121005, %v3129_v24  ;;  %v927_v36 = vadd.s32 %v2833_v62, %v859_v16  ;;  %v4014_v21 = vld [vmem:[#allocation13_spill] sm:$0xff] }
 0x12b   : > { %4012 = vst [vmem:[#allocation11_spill] sm:$0xff] %v3135_v30  ;;  %v495_v27 = vmul.f32 1.442695, %v381_v46  ;;  %605 = vadd.xlane.f32.xlu1 %v3125_v29  ;;  %607 = vadd.xlane.f32.xlu0 %v3135_v30  ;;  %v497_v4 = vmul.f32 1.442695, %v382_v55  ;;  %v3142_v1 = vpop.eup %2179  ;;  %v4015_v46 = vld [vmem:[#allocation14_spill] sm:$0xff]  ;;  %v1120_v55 = vxor.u32 %v2871_v14, %v1053_v39  ;;  %v3155_v43 = vxor.u32 %v1183_v47, %v1119_v10 }
 0x12c   : > { %4013 = vst [vmem:[#allocation12_spill] sm:$0xff] %v3142_v1  ;;  %v308_v22 = vpop.xlane.xlu0 %307  ;;  %v310_v45 = vpop.xlane.xlu1 %309  ;;  %v1501_v29 = vmul.u32 2221713035, %v3137_v54  ;;  %v1054_v13 = vadd.s32 %v990_v28, %v2852_v51  ;;  %v928_v38 = vadd.s32 %v2833_v62, %v860_v59  ;;  %v3161_v16 = vxor.u32 %v1563_v18, %v1499_v48  ;;  %v4018_v59 = vld [vmem:[#allocation15_spill] sm:$0xff] }
 0x12d   : > { %2193 = vpow2.f32 %v495_v27  ;;  %v383_v9 = vsub.f32 %v4014_v21, %v308_v22  ;;  %v384_v44 = vsub.f32 %v4015_v46, %v310_v45  ;;  %v1564_v54 = vshrl.u32 %v1500_v0, 16  ;;  %v4019_v45 = vld [vmem:[#allocation16_spill] sm:$0xff] }
 0x12e   : > { %v3152_v30 = vpop.eup %2181  ;;  %2195 = vpow2.f32 %v497_v4  ;;  %v1374_v47 = vshrl.u32 %v1310_v31, 15  ;;  %v991_v10 = vmul.u32 128, %v927_v36  ;;  %v861_v28 = vadd.s32 136, %v2831_v61 }
 0x12f   : > { %4016 = vst [vmem:[#allocation13_spill] sm:$0xff] %v3152_v30  ;;  %v499_v17 = vmul.f32 1.442695, %v383_v9  ;;  %609 = vadd.xlane.f32.xlu1 %v3142_v1  ;;  %611 = vadd.xlane.f32.xlu0 %v3152_v30  ;;  %v501_v24 = vmul.f32 1.442695, %v384_v44  ;;  %v3163_v39 = vpop.eup %2183  ;;  %v1184_v9 = vshrl.u32 %v1120_v55, 16  ;;  %v1121_v18 = vxor.u32 %v2871_v14, %v1054_v13 }
 0x130   : > { %4017 = vst [vmem:[#allocation14_spill] sm:$0xff] %v3163_v39  ;;  %v312_v27 = vpop.xlane.xlu0 %311  ;;  %v314_v22 = vpop.xlane.xlu1 %313  ;;  %v1565_v44 = vshrl.u32 %v1501_v29, 16  ;;  %v1311_v48 = vmul.u32 2146121005, %v3155_v43  ;;  %v992_v30 = vmul.u32 128, %v928_v38  ;;  %v3177_v1 = vxor.u32 %v1564_v54, %v1500_v0 }
 0x131   : > { %2197 = vpow2.f32 %v499_v17  ;;  %v385_v4 = vsub.f32 %v4018_v59, %v312_v27  ;;  %v386_v21 = vsub.f32 %v4019_v45, %v314_v22  ;;  %v929_v27 = vadd.s32 %v2833_v62, %v861_v28 }
 0x132   : > { %v3168_v46 = vpop.eup %2185  ;;  %2199 = vpow2.f32 %v501_v24  ;;  %v3179_v43 = vxor.u32 %v1374_v47, %v1310_v31  ;;  %v1055_v13 = vadd.s32 %v991_v10, %v2852_v51  ;;  %v862_v38 = vadd.s32 144, %v2831_v61  ;;  %v2349_v24 = vld [vmem:[%s2577_s6 + $0x1c0] sm:$0xff] }
 0x133   : > { %4020 = vst [vmem:[#allocation15_spill] sm:$0xff] %v3168_v46  ;;  %v503_v36 = vmul.f32 1.442695, %v385_v4  ;;  %613 = vadd.xlane.f32.xlu1 %v3163_v39  ;;  %615 = vadd.xlane.f32.xlu0 %v3168_v46  ;;  %v505_v17 = vmul.f32 1.442695, %v386_v21  ;;  %v3175_v22 = vpop.eup %2187  ;;  %v2350_v39 = vld [vmem:[%s2577_s6 + $0x1c8] sm:$0xff]  ;;  %v3185_v21 = vxor.u32 %v1184_v9, %v1120_v55  ;;  %v3189_v5 = vxor.u32 %v1565_v44, %v1501_v29 }
 0x134   : > { %4021 = vst [vmem:[#allocation16_spill] sm:$0xff] %v3175_v22  ;;  %v316_v59 = vpop.xlane.xlu0 %315  ;;  %v318_v45 = vpop.xlane.xlu1 %317  ;;  %v1375_v41 = vshrl.u32 %v1311_v48, 15  ;;  %v1185_v0 = vshrl.u32 %v1121_v18, 16  ;;  %v1056_v31 = vadd.s32 %v992_v30, %v2852_v51  ;;  %v1122_v44 = vxor.u32 %v2871_v14, %v1055_v13 }
 0x135   : > { %2201 = vpow2.f32 %v503_v36  ;;  %v387_v4 = vsub.f32 %v2349_v24, %v316_v59  ;;  %v388_v46 = vsub.f32 %v2350_v39, %v318_v45  ;;  %v993_v39 = vmul.u32 128, %v929_v27  ;;  %v2352_v45 = vld [vmem:[%s2577_s6 + $0x1d8] sm:$0xff] }
 0x136   : > { %v3187_v28 = vpop.eup %2189  ;;  %2203 = vpow2.f32 %v505_v17  ;;  %v930_v36 = vadd.s32 %v2833_v62, %v862_v38  ;;  %v863_v30 = vadd.s32 152, %v2831_v61  ;;  %v2351_v17 = vld [vmem:[%s2577_s6 + $0x1d0] sm:$0xff]  ;;  %v1123_v29 = vxor.u32 %v2871_v14, %v1056_v31 }
 0x137   : > { %4022 = vst [vmem:[#allocation48_spill] sm:$0xff] %v3187_v28  ;;  %v507_v54 = vmul.f32 1.442695, %v387_v4  ;;  %617 = vadd.xlane.f32.xlu1 %v3175_v22  ;;  %619 = vadd.xlane.f32.xlu0 %v3187_v28  ;;  %v509_v47 = vmul.f32 1.442695, %v388_v46  ;;  %v3194_v55 = vpop.eup %2191  ;;  %v3205_v4 = vxor.u32 %v1375_v41, %v1311_v48  ;;  %v3207_v28 = vxor.u32 %v1185_v0, %v1121_v18 }
 0x138   : > { %4023 = vst [vmem:[#allocation49_spill] sm:$0xff] %v3194_v55  ;;  %v320_v10 = vpop.xlane.xlu0 %319  ;;  %v322_v9 = vpop.xlane.xlu1 %321  ;;  %v1312_v46 = vmul.u32 2146121005, %v3185_v21  ;;  %v1057_v13 = vadd.s32 %v993_v39, %v2852_v51  ;;  %v931_v21 = vadd.s32 %v2833_v62, %v863_v30  ;;  %v4026_v18 = vmul.u32 2221713035, %v3179_v43 }
 0x139   : > { %2205 = vpow2.f32 %v507_v54  ;;  %v389_v59 = vsub.f32 %v2351_v17, %v320_v10  ;;  %v390_v24 = vsub.f32 %v2352_v45, %v322_v9  ;;  %v1186_v31 = vshrl.u32 %v1122_v44, 16  ;;  %v2353_v9 = vld [vmem:[%s2577_s6 + $0x1e0] sm:$0xff] }
 0x13a   : > { %v3203_v27 = vpop.eup %2193  ;;  %2207 = vpow2.f32 %v509_v47  ;;  %v3218_v0 = vshrl.u32 %v4026_v18, 16  ;;  %v1124_v47 = vxor.u32 %v2871_v14, %v1057_v13  ;;  %v994_v39 = vmul.u32 128, %v930_v36 }
 0x13b   : > { %4024 = vst [vmem:[#allocation50_spill] sm:$0xff] %v3203_v27  ;;  %v511_v38 = vmul.f32 1.442695, %v389_v59  ;;  %621 = vadd.xlane.f32.xlu1 %v3194_v55  ;;  %623 = vadd.xlane.f32.xlu0 %v3203_v27  ;;  %v513_v54 = vmul.f32 1.442695, %v390_v24  ;;  %v3214_v10 = vpop.eup %2195  ;;  %v2354_v59 = vld [vmem:[%s2577_s6 + $0x1e8] sm:$0xff] }
 0x13c   : > { %4025 = vst [vmem:[#allocation51_spill] sm:$0xff] %v3214_v10  ;;  %v324_v41 = vpop.xlane.xlu0 %323  ;;  %v326_v48 = vpop.xlane.xlu1 %325  ;;  %v1376_v24 = vshrl.u32 %v1312_v46, 15  ;;  %v1313_v55 = vmul.u32 2146121005, %v3207_v28  ;;  %v1187_v22 = vshrl.u32 %v1123_v29, 16  ;;  %v1058_v18 = vadd.s32 %v994_v39, %v2852_v51 }
 0x13d   : > { %2209 = vpow2.f32 %v511_v38  ;;  %v391_v17 = vsub.f32 %v2353_v9, %v324_v41  ;;  %v392_v45 = vsub.f32 %v2354_v59, %v326_v48  ;;  %v995_v38 = vmul.u32 128, %v931_v21 }
 0x13e   : > { %v3223_v27 = vpop.eup %2197  ;;  %2211 = vpow2.f32 %v513_v54  ;;  %v3232_v59 = vxor.u32 %v1186_v31, %v1122_v44  ;;  %v1188_v28 = vshrl.u32 %v1124_v47, 16  ;;  %v1125_v30 = vxor.u32 %v2871_v14, %v1058_v18  ;;  %v2355_v54 = vld [vmem:[%s2577_s6 + $0x1f0] sm:$0xff] }
 0x13f   : > { %4027 = vst [vmem:[#allocation52_spill] sm:$0xff] %v3223_v27  ;;  %v515_v13 = vmul.f32 1.442695, %v391_v17  ;;  %625 = vadd.xlane.f32.xlu1 %v3214_v10  ;;  %627 = vadd.xlane.f32.xlu0 %v3223_v27  ;;  %v517_v36 = vmul.f32 1.442695, %v392_v45  ;;  %v3230_v41 = vpop.eup %2199  ;;  %v864_v39 = vadd.s32 160, %v2831_v61  ;;  %v3238_v32 = vxor.u32 %v1376_v24, %v1312_v46 }
 0x140   : > { %4028 = vst [vmem:[#allocation53_spill] sm:$0xff] %v3230_v41  ;;  %v328_v48 = vpop.xlane.xlu0 %327  ;;  %v330_v9 = vpop.xlane.xlu1 %329  ;;  %v4030_v21 = vmul.u32 2221713035, %v3205_v4  ;;  %v1377_v44 = vshrl.u32 %v1313_v55, 15  ;;  %v1251_v31 = vxor.u32 %v1187_v22, %v1123_v29  ;;  %v1189_v19 = vshrl.u32 %v1125_v30, 16 }
 0x141   : > { %2213 = vpow2.f32 %v515_v13  ;;  %v393_v17 = vsub.f32 %v2355_v54, %v328_v48  ;;  %v394_v10 = vsub.f32 %v2356_v25, %v330_v9  ;;  %v1059_v25 = vadd.s32 %v995_v38, %v2852_v51 }
 0x142   : > { %v3240_v45 = vpop.eup %2201  ;;  %v3244_v27 = vshrl.u32 %v4030_v21, 16  ;;  %2215 = vpow2.f32 %v517_v36  ;;  %v1314_v24 = vmul.u32 2146121005, %v3232_v59  ;;  %v3252_v48 = vxor.u32 %v1188_v28, %v1124_v47 }
 0x143   : > { %4029 = vst [vmem:[#allocation54_spill] sm:$0xff] %v3240_v45  ;;  %v519_v18 = vmul.f32 1.442695, %v393_v17  ;;  %629 = vadd.xlane.f32.xlu1 %v3230_v41  ;;  %631 = vadd.xlane.f32.xlu0 %v3240_v45  ;;  %v521_v13 = vmul.f32 1.442695, %v394_v10  ;;  %v3249_v46 = vpop.eup %2203  ;;  %v932_v9 = vadd.s32 %v2833_v62, %v864_v39  ;;  %v865_v22 = vadd.s32 168, %v2831_v61 }
 0x144   : > { %4031 = vst [vmem:[#allocation55_spill] sm:$0xff] %v3249_v46  ;;  %v1126_v36 = vxor.u32 %v2871_v14, %v1059_v25  ;;  %v866_v54 = vadd.s32 176, %v2831_v61  ;;  %v3261_v38 = vxor.u32 %v1377_v44, %v1313_v55  ;;  %v1315_v17 = vmul.u32 2146121005, %v1251_v31 }
 0x145   : > { %2217 = vpow2.f32 %v519_v18  ;;  %v3263_v21 = vxor.u32 %v1189_v19, %v1125_v30  ;;  %v996_v47 = vmul.u32 128, %v932_v9  ;;  %v933_v28 = vadd.s32 %v2833_v62, %v865_v22 }
 0x146   : > { %v3259_v10 = vpop.eup %2205  ;;  %2219 = vpow2.f32 %v521_v13  ;;  %v1190_v59 = vshrl.u32 %v1126_v36, 16  ;;  %v934_v39 = vadd.s32 %v2833_v62, %v866_v54  ;;  %v1378_v25 = vshrl.u32 %v1314_v24, 15 }
 0x147   : > { %4032 = vst [vmem:[#allocation56_spill] sm:$0xff] %v3259_v10  ;;  %633 = vadd.xlane.f32.xlu1 %v3249_v46  ;;  %635 = vadd.xlane.f32.xlu0 %v3259_v10  ;;  %v3269_v18 = vpop.eup %2207  ;;  %v1316_v55 = vmul.u32 2146121005, %v3252_v48  ;;  %v1060_v44 = vadd.s32 %v996_v47, %v2852_v51  ;;  %v867_v19 = vadd.s32 184, %v2831_v61  ;;  %v997_v31 = vmul.u32 128, %v933_v28 }
 0x148   : > { %4033 = vst [vmem:[#allocation57_spill] sm:$0xff] %v3269_v18  ;;  %v1254_v30 = vxor.u32 %v1190_v59, %v1126_v36  ;;  %v998_v13 = vmul.u32 128, %v934_v39  ;;  %v868_v9 = vadd.s32 192, %v2831_v61  ;;  %v1379_v10 = vshrl.u32 %v1315_v17, 15 }
 0x149   : > { %v1317_v22 = vmul.u32 2146121005, %v3263_v21  ;;  %v1127_v54 = vxor.u32 %v2871_v14, %v1060_v44  ;;  %v935_v46 = vadd.s32 %v2833_v62, %v867_v19  ;;  %v1061_v36 = vadd.s32 %v997_v31, %v2852_v51 }
 0x14a   : > { %v3275_v29 = vpop.eup %2209  ;;  %v1318_v48 = vmul.u32 2146121005, %v1254_v30  ;;  %v1062_v47 = vadd.s32 %v998_v13, %v2852_v51  ;;  %v936_v59 = vadd.s32 %v2833_v62, %v868_v9  ;;  %v1505_v39 = vmul.u32 2221713035, %v3261_v38 }
 0x14b   : > { %4034 = vst [vmem:[#allocation58_spill] sm:$0xff] %v3275_v29  ;;  %637 = vadd.xlane.f32.xlu1 %v3269_v18  ;;  %639 = vadd.xlane.f32.xlu0 %v3275_v29  ;;  %v3285_v28 = vpop.eup %2211  ;;  %v3288_v21 = vxor.u32 %v1378_v25, %v1314_v24  ;;  %v1191_v44 = vshrl.u32 %v1127_v54, 16  ;;  %v999_v45 = vmul.u32 128, %v935_v46  ;;  %v1380_v19 = vshrl.u32 %v1316_v55, 15 }
 0x14c   : > { %4035 = vst [vmem:[#allocation59_spill] sm:$0xff] %v3285_v28  ;;  %v1128_v18 = vxor.u32 %v2871_v14, %v1061_v36  ;;  %v1129_v29 = vxor.u32 %v2871_v14, %v1062_v47  ;;  %v1000_v30 = vmul.u32 128, %v936_v59  ;;  %v3294_v31 = vxor.u32 %v1379_v10, %v1315_v17 }
 0x14d   : > { %v1381_v13 = vshrl.u32 %v1317_v22, 15  ;;  %v1255_v9 = vxor.u32 %v1191_v44, %v1127_v54  ;;  %v1063_v37 = vadd.s32 %v999_v45, %v2852_v51  ;;  %v1382_v24 = vshrl.u32 %v1318_v48, 15 }
 0x14e   : > { %v3292_v41 = vpop.eup %2213  ;;  %v1192_v46 = vshrl.u32 %v1128_v18, 16  ;;  %v1193_v38 = vshrl.u32 %v1129_v29, 16  ;;  %v1064_v25 = vadd.s32 %v1000_v30, %v2852_v51  ;;  %v4038_v47 = vmul.u32 2221713035, %v3238_v32 }
 0x14f   : > { %4036 = vst [vmem:[#allocation60_spill] sm:$0xff] %v3292_v41  ;;  %641 = vadd.xlane.f32.xlu1 %v3285_v28  ;;  %643 = vadd.xlane.f32.xlu0 %v3292_v41  ;;  %v3300_v36 = vpop.eup %2215  ;;  %v1319_v10 = vmul.u32 2146121005, %v1255_v9  ;;  %v1130_v17 = vxor.u32 %v2871_v14, %v1063_v37  ;;  %v869_v54 = vadd.s32 200, %v2831_v61  ;;  %v1444_v45 = vxor.u32 %v1380_v19, %v1316_v55 }
 0x150   : > { %4037 = vst [vmem:[#allocation61_spill] sm:$0xff] %v3300_v36  ;;  %v1568_v59 = vshrl.u32 %v4038_v47, 16  ;;  %v1256_v44 = vxor.u32 %v1192_v46, %v1128_v18  ;;  %v1257_v28 = vxor.u32 %v1193_v38, %v1129_v29  ;;  %v1131_v41 = vxor.u32 %v2871_v14, %v1064_v25 }
 0x151   : > { %v1569_v35 = vshrl.u32 %v1505_v39, 16  ;;  %v1383_v15 = vshrl.u32 %v1319_v10, 15  ;;  %v1194_v30 = vshrl.u32 %v1130_v17, 16  ;;  %v937_v11 = vadd.s32 %v2833_v62, %v869_v54 }
 0x152   : > { %v3307_v56 = vpop.eup %2217  ;;  %v1506_v37 = vmul.u32 2221713035, %v3288_v21  ;;  %v1507_v9 = vmul.u32 2221713035, %v3294_v31  ;;  %v1445_v55 = vxor.u32 %v1381_v13, %v1317_v22  ;;  %v1446_v18 = vxor.u32 %v1382_v24, %v1318_v48 }
 0x153   : > { %4039 = vst [vmem:[#allocation62_spill] sm:$0xff] %v3307_v56  ;;  %645 = vadd.xlane.f32.xlu1 %v3300_v36  ;;  %647 = vadd.xlane.f32.xlu0 %v3307_v56  ;;  %v3314_v29 = vpop.eup %2219  ;;  %v1320_v19 = vmul.u32 2146121005, %v1256_v44  ;;  %v1195_v46 = vshrl.u32 %v1131_v41, 16  ;;  %v1001_v38 = vmul.u32 128, %v937_v11  ;;  %v870_v25 = vadd.s32 208, %v2831_v61 }
 0x154   : > { %4040 = vst [vmem:[#allocation63_spill] sm:$0xff] %v3314_v29  ;;  %v4041_v47 = vmul.u32 2221713035, %v3179_v43  ;;  %v4042_v56 = vmul.u32 2221713035, %v3205_v4  ;;  %v1447_v48 = vxor.u32 %v1383_v15, %v1319_v10  ;;  %v1258_v13 = vxor.u32 %v1194_v30, %v1130_v17 }
 0x155   : > { %v1508_v31 = vmul.u32 2221713035, %v1444_v45  ;;  %v1321_v22 = vmul.u32 2146121005, %v1257_v28  ;;  %v1065_v24 = vadd.s32 %v1001_v38, %v2852_v51  ;;  %v938_v11 = vadd.s32 %v2833_v62, %v870_v25 }
 0x156   : > { %v3320_v54 = vxor.u32 %v3218_v0, %v4041_v47  ;;  %v3325_v21 = vxor.u32 %v3244_v27, %v4042_v56  ;;  %v4043_v43 = vmul.u32 2221713035, %v3238_v32  ;;  %v3334_v0 = vxor.u32 %v1569_v35, %v1505_v39 }
 0x157   : > { %649 = vadd.xlane.f32.xlu1 %v3314_v29  ;;  %v1509_v4 = vmul.u32 2221713035, %v1445_v55  ;;  %v1510_v47 = vmul.u32 2221713035, %v1446_v18  ;;  %v1384_v56 = vshrl.u32 %v1320_v19, 15  ;;  %v1259_v27 = vxor.u32 %v1195_v46, %v1131_v41 }
 0x158   : > { %v3332_v44 = vxor.u32 %v1568_v59, %v4043_v43  ;;  %v1132_v28 = vxor.u32 %v2871_v14, %v1065_v24  ;;  %v1002_v15 = vmul.u32 128, %v938_v11  ;;  %v1570_v10 = vshrl.u32 %v1506_v37, 16 }
 0x159   : > { %v1571_v17 = vshrl.u32 %v1507_v9, 16  ;;  %v1385_v45 = vshrl.u32 %v1321_v22, 15  ;;  %v871_v30 = vadd.s32 216, %v2831_v61  ;;  %v1511_v38 = vmul.u32 2221713035, %v1447_v48 }
 0x15a   : > { %v1322_v25 = vmul.u32 2146121005, %v1258_v13  ;;  %v1196_v29 = vshrl.u32 %v1132_v28, 16  ;;  %v1066_v32 = vadd.s32 %v1002_v15, %v2852_v51  ;;  %v1572_v59 = vshrl.u32 %v1508_v31, 16 }
 0x15b   : > { %v1573_v35 = vshrl.u32 %v1509_v4, 16  ;;  %v1574_v39 = vshrl.u32 %v1510_v47, 16  ;;  %v939_v55 = vadd.s32 %v2833_v62, %v871_v30  ;;  %v3340_v18 = vxor.u32 %v1384_v56, %v1320_v19 }
 0x15c   : > { %v1323_v41 = vmul.u32 2146121005, %v1259_v27  ;;  %v1260_v46 = vxor.u32 %v1196_v29, %v1132_v28  ;;  %v1133_v24 = vxor.u32 %v2871_v14, %v1066_v32  ;;  %v3343_v11 = vxor.u32 %v1570_v10, %v1506_v37 }
 0x15d   : > { %v3345_v43 = vxor.u32 %v1571_v17, %v1507_v9  ;;  %v3347_v48 = vxor.u32 %v1385_v45, %v1321_v22  ;;  %v1003_v13 = vmul.u32 128, %v939_v55  ;;  %v1575_v36 = vshrl.u32 %v1511_v38, 16 }
 0x15e   : > { %v1386_v15 = vshrl.u32 %v1322_v25, 15  ;;  %v1324_v57 = vmul.u32 2146121005, %v1260_v46  ;;  %v3350_v8 = vxor.u32 %v1572_v59, %v1508_v31  ;;  %v3352_v19 = vxor.u32 %v1573_v35, %v1509_v4 }
 0x15f   : > { %v1197_v56 = vshrl.u32 %v1133_v24, 16  ;;  %v1067_v29 = vadd.s32 %v1003_v13, %v2852_v51  ;;  %v3355_v37 = vxor.u32 %v1574_v39, %v1510_v47  ;;  %v1512_v9 = vmul.u32 2221713035, %v3340_v18 }
 0x160   : > { %v524_v27 = vpop.xlane.xlu0 %523  ;;  %v1387_v22 = vshrl.u32 %v1323_v41, 15  ;;  %v940_v28 = vadd.s32 %v2833_v62, %v872_v2  ;;  %v1513_v10 = vmul.u32 2221713035, %v3347_v48  ;;  %v873_v31 = vadd.s32 232, %v2831_v61 }
 0x161   : > { %4044 = vst [vmem:[#allocation64_spill] sm:$0xff] %v3355_v37  ;;  %2221 = vrcp.f32 %v524_v27  ;;  %v1134_v17 = vxor.u32 %v2871_v14, %v1067_v29  ;;  %v3362_v4 = vxor.u32 %v1575_v36, %v1511_v38  ;;  %v3364_v45 = vxor.u32 %v1386_v15, %v1322_v25 }
 0x162   : > { %v1388_v30 = vshrl.u32 %v1324_v57, 15  ;;  %v1004_v32 = vmul.u32 128, %v940_v28  ;;  %v1261_v47 = vxor.u32 %v1197_v56, %v1133_v24  ;;  %v941_v35 = vadd.s32 %v2833_v62, %v873_v31 }
 0x163   : > { %4045 = vst [vmem:[#allocation65_spill] sm:$0xff] %v3362_v4  ;;  %v1198_v59 = vshrl.u32 %v1134_v17, 16  ;;  %v874_v39 = vadd.s32 240, %v2831_v61  ;;  %v1576_v18 = vshrl.u32 %v1512_v9, 16  ;;  %v1451_v46 = vxor.u32 %v1387_v22, %v1323_v41 }
 0x164   : > { %v526_v2 = vpop.xlane.xlu1 %525  ;;  %v528_v55 = vpop.xlane.xlu0 %527  ;;  %v1068_v48 = vadd.s32 %v1004_v32, %v2852_v51  ;;  %v875_v13 = vadd.s32 248, %v2831_v61  ;;  %v1005_v38 = vmul.u32 128, %v941_v35  ;;  %v1514_v24 = vmul.u32 2221713035, %v3364_v45 }
 0x165   : > { %2223 = vrcp.f32 %v526_v2  ;;  %v1262_v36 = vxor.u32 %v1198_v59, %v1134_v17  ;;  %v942_v25 = vadd.s32 %v2833_v62, %v874_v39  ;;  %v3372_v15 = vxor.u32 %v1388_v30, %v1324_v57 }
 0x166   : > { %2225 = vrcp.f32 %v528_v55  ;;  %v1135_v56 = vxor.u32 %v2871_v14, %v1068_v48  ;;  %v1325_v29 = vmul.u32 2146121005, %v1261_v47  ;;  %v1069_v27 = vadd.s32 %v1005_v38, %v2852_v51 }
 0x167   : > { %v1006_v41 = vmul.u32 128, %v942_v25  ;;  %v943_v22 = vadd.s32 %v2833_v62, %v875_v13  ;;  %vm1683_vm0 = vcmp.ge.u32.totalorder %v2983_v12, 429496729  ;;  %v1577_v31 = vshrl.u32 %v1513_v10, 16 }
 0x168   : > { %v530_v28 = vpop.xlane.xlu1 %529  ;;  %v532_v17 = vpop.xlane.xlu0 %531  ;;  %v1515_v32 = vmul.u32 2221713035, %v1451_v46  ;;  %v1326_v59 = vmul.u32 2146121005, %v1262_v36  ;;  %v1199_v35 = vshrl.u32 %v1135_v56, 16  ;;  %v1136_v57 = vxor.u32 %v2871_v14, %v1069_v27 }
 0x169   : > { %2227 = vrcp.f32 %v530_v28  ;;  %v1070_v45 = vadd.s32 %v1006_v41, %v2852_v51  ;;  %v876_v30 = vadd.s32 256, %v2831_v61  ;;  %v3381_v47 = vxor.u32 %v1576_v18, %v1512_v9 }
 0x16a   : > { %2229 = vrcp.f32 %v532_v17  ;;  %v1516_v39 = vmul.u32 2221713035, %v3372_v15  ;;  %v1263_v2 = vxor.u32 %v1199_v35, %v1135_v56  ;;  %v1389_v55 = vshrl.u32 %v1325_v29, 15 }
 0x16b   : > { %4046 = vst [vmem:[#allocation66_spill] sm:$0xff] %v3381_v47  ;;  %v1200_v48 = vshrl.u32 %v1136_v57, 16  ;;  %v1137_v13 = vxor.u32 %v2871_v14, %v1070_v45  ;;  %v1007_v46 = vmul.u32 128, %v943_v22  ;;  %vm1684_vm1 = vcmp.ge.u32.totalorder %v3012_v34, 429496729 }
 0x16c   : > { %v534_v36 = vpop.xlane.xlu1 %533  ;;  %v536_v38 = vpop.xlane.xlu0 %535  ;;  %v1578_v25 = vshrl.u32 %v1514_v24, 16  ;;  %v1579_v27 = vshrl.u32 %v1515_v32, 16  ;;  %v1390_v41 = vshrl.u32 %v1326_v59, 15  ;;  %v1327_v28 = vmul.u32 2146121005, %v1263_v2 }
 0x16d   : > { %vm1685_vm2 = vcmp.ge.u32.totalorder %v3031_v26, 429496729  ;;  %2231 = vrcp.f32 %v534_v36  ;;  %v1264_v9 = vxor.u32 %v1200_v48, %v1136_v57  ;;  %v1201_v18 = vshrl.u32 %v1137_v13, 16 }
 0x16e   : > { %v944_v15 = vadd.s32 %v2833_v62, %v876_v30  ;;  %v2222_v56 = vpop.eup %2221  ;;  %2233 = vrcp.f32 %v536_v38  ;;  %v3388_v17 = vxor.u32 %v1577_v31, %v1513_v10  ;;  %v1391_v22 = vshrl.u32 %v1327_v28, 15 }
 0x16f   : > { %v1071_v35 = vadd.s32 %v1007_v46, %v2852_v51  ;;  %v779_v45 = vmul.f32 1.1111112, %v2222_v56  ;;  %v1580_v47 = vshrl.u32 %v1516_v39, 16  ;;  %v3391_v4 = vxor.u32 %v1389_v55, %v1325_v29 }
 0x170   : > { %v1328_v37 = vmul.u32 2146121005, %v1264_v9  ;;  %vm1686_vm3 = vcmp.ge.u32.totalorder %v3063_v23, 429496729  ;;  %v538_v2 = vpop.xlane.xlu1 %537  ;;  %v540_v36 = vpop.xlane.xlu0 %539  ;;  %v3394_v57 = vxor.u32 %v1578_v25, %v1514_v24  ;;  %v3396_v48 = vxor.u32 %v1579_v27, %v1515_v32 }
 0x171   : > { %v3398_v30 = vxor.u32 %v1201_v18, %v1137_v13  ;;  %v1138_v10 = vxor.u32 %v2871_v14, %v1071_v35  ;;  %v1747_v31 = vmul.f32 %v2825_v49, %v779_v45  ;;  %vm1687_vm4 = vcmp.ge.u32.totalorder %v3084_v40, 429496729 }
 0x172   : > { %2235 = vrcp.f32 %v538_v2  ;;  %v3403_v29 = vxor.u32 %v1390_v41, %v1326_v59  ;;  %v1008_v55 = vmul.u32 128, %v944_v15  ;;  %v2224_v46 = vpop.eup %2223  ;;  %v3405_v38 = vxor.u32 %v1391_v22, %v1327_v28 }
 0x173   : > { %2237 = vrcp.f32 %v540_v36  ;;  %v1392_v24 = vshrl.u32 %v1328_v37, 15  ;;  %v1202_v32 = vshrl.u32 %v1138_v10, 16  ;;  %v2226_v25 = vpop.eup %2225  ;;  %v1811_v13 = vsel %vm1683_vm0, %v1747_v31, 0.0 }
 0x174   : > { %v780_v27 = vmul.f32 1.1111112, %v2224_v46  ;;  %v3409_v9 = vxor.u32 %v1580_v47, %v1516_v39  ;;  %v1517_v49 = vmul.u32 2221713035, %v3391_v4  ;;  %1875 = vst [vmem:[%s3414_s4] sm:$0xff] %v1811_v13  ;;  %v781_v59 = vmul.f32 1.1111112, %v2226_v25  ;;  %v542_v41 = vpop.xlane.xlu1 %541  ;;  %v544_v28 = vpop.xlane.xlu0 %543 }
 0x175   : > { %vm1688_vm5 = vcmp.ge.u32.totalorder %v3111_v33, 429496729  ;;  %v1329_v18 = vmul.u32 2146121005, %v3398_v30  ;;  %v1266_v15 = vxor.u32 %v1202_v32, %v1138_v10  ;;  %v877_v12 = vadd.s32 264, %v2831_v61 }
 0x176   : > { %v1748_v47 = vmul.f32 %v2839_v63, %v780_v27  ;;  %vm1689_vm6 = vcmp.ge.u32.totalorder %v3118_v42, 429496729  ;;  %2239 = vrcp.f32 %v542_v41  ;;  %v1518_v4 = vmul.u32 2221713035, %v3403_v29  ;;  %v2228_v56 = vpop.eup %2227 }
 0x177   : > { %v1072_v39 = vadd.s32 %v1008_v55, %v2852_v51  ;;  %v1749_v22 = vmul.f32 %v2829_v7, %v781_v59  ;;  %2241 = vrcp.f32 %v544_v28  ;;  %v1519_v35 = vmul.u32 2221713035, %v3405_v38  ;;  %v2230_v2 = vpop.eup %2229 }
 0x178   : > { %v3426_v45 = vxor.u32 %v1392_v24, %v1328_v37  ;;  %v1812_v63 = vsel %vm1684_vm1, %v1748_v47, 0.0  ;;  %v782_v36 = vmul.f32 1.1111112, %v2228_v56  ;;  %v1581_v30 = vshrl.u32 %v1517_v49, 16  ;;  %v546_v7 = vpop.xlane.xlu1 %545  ;;  %v548_v55 = vpop.xlane.xlu0 %547 }
 0x179   : > { %v1330_v10 = vmul.u32 2146121005, %v1266_v15  ;;  %1876 = vst [vmem:[%s3414_s4 + $0x8] sm:$0xff] %v1812_v63  ;;  %v1813_v31 = vsel %vm1685_vm2, %v1749_v22, 0.0  ;;  %v783_v29 = vmul.f32 1.1111112, %v2230_v2  ;;  %v1139_v37 = vxor.u32 %v2871_v14, %v1072_v39 }
 0x17a   : > { %vm1690_vm7 = vcmp.ge.u32.totalorder %v3144_v20, 429496729  ;;  %v1393_v46 = vshrl.u32 %v1329_v18, 15  ;;  %1877 = vst [vmem:[%s3414_s4 + $0x10] sm:$0xff] %v1813_v31  ;;  %v1750_v34 = vmul.f32 %v2845_v53, %v782_v36  ;;  %vm1691_vm8 = vcmp.ge.u32.totalorder %v3161_v16, 429496729  ;;  %v2232_v26 = vpop.eup %2231 }
 0x17b   : > { %2243 = vrcp.f32 %v546_v7  ;;  %v1582_v38 = vshrl.u32 %v1518_v4, 16  ;;  %v945_v24 = vadd.s32 %v2833_v62, %v877_v12  ;;  %v1751_v32 = vmul.f32 %v2850_v50, %v783_v29  ;;  %v2234_v27 = vpop.eup %2233 }
 0x17c   : > { %2245 = vrcp.f32 %v548_v55  ;;  %v1520_v25 = vmul.u32 2221713035, %v3426_v45  ;;  %v1394_v13 = vshrl.u32 %v1330_v10, 15  ;;  %v1814_v59 = vsel %vm1686_vm3, %v1750_v34, 0.0  ;;  %v550_v50 = vpop.xlane.xlu1 %549  ;;  %v552_v47 = vpop.xlane.xlu0 %551 }
 0x17d   : > { %v784_v41 = vmul.f32 1.1111112, %v2232_v26  ;;  %v3443_v53 = vxor.u32 %v1581_v30, %v1517_v49  ;;  %v1583_v28 = vshrl.u32 %v1519_v35, 16  ;;  %1878 = vst [vmem:[%s3414_s4 + $0x18] sm:$0xff] %v1814_v59  ;;  %v1815_v15 = vsel %vm1687_vm4, %v1751_v32, 0.0 }
 0x17e   : > { %v785_v12 = vmul.f32 1.1111112, %v2234_v27  ;;  %vm1692_vm9 = vcmp.ge.u32.totalorder %v3177_v1, 429496729  ;;  %v3449_v39 = vxor.u32 %v1393_v46, %v1329_v18  ;;  %v1203_v56 = vshrl.u32 %v1139_v37, 16  ;;  %1879 = vst [vmem:[%s3414_s4 + $0x20] sm:$0xff] %v1815_v15 }
 0x17f   : > { %v1752_v23 = vmul.f32 %v2857_v58, %v784_v41  ;;  %vm1693_vm10 = vcmp.ge.u32.totalorder %v3189_v5, 429496729  ;;  %2247 = vrcp.f32 %v550_v50  ;;  %v3454_v49 = vxor.u32 %v1582_v38, %v1518_v4  ;;  %v2236_v40 = vpop.eup %2235  ;;  %v4047_v50 = vld [vmem:[#allocation17_spill] sm:$0xff] }
 0x180   : > { %v1009_v22 = vmul.u32 128, %v945_v24  ;;  %v1753_v45 = vmul.f32 %v2863_v60, %v785_v12  ;;  %2249 = vrcp.f32 %v552_v47  ;;  %v1584_v2 = vshrl.u32 %v1520_v25, 16  ;;  %v2238_v18 = vpop.eup %2237  ;;  %v554_v60 = vpop.xlane.xlu1 %553 }
 0x181   : > { %v3457_v63 = vxor.u32 %v1394_v13, %v1330_v10  ;;  %v1816_v36 = vsel %vm1688_vm5, %v1752_v23, 0.0  ;;  %v786_v30 = vmul.f32 1.1111112, %v2236_v40  ;;  %v3461_v58 = vxor.u32 %v1583_v28, %v1519_v35  ;;  %v556_v7 = vpop.xlane.xlu0 %555 }
 0x182   : > { %v1073_v31 = vadd.s32 %v1009_v22, %v2852_v51  ;;  %1880 = vst [vmem:[%s3414_s4 + $0x28] sm:$0xff] %v1816_v36  ;;  %v1817_v4 = vsel %vm1689_vm6, %v1753_v45, 0.0  ;;  %v787_v29 = vmul.f32 1.1111112, %v2238_v18  ;;  %vm1694_vm11 = vcmp.ge.u32.totalorder %v3320_v54, 429496729 }
 0x183   : > { %v1521_v10 = vmul.u32 2221713035, %v3449_v39  ;;  %v3469_v55 = vxor.u32 %v1203_v56, %v1139_v37  ;;  %1881 = vst [vmem:[%s3414_s4 + $0x30] sm:$0xff] %v1817_v4  ;;  %v1754_v33 = vmul.f32 %v2869_v52, %v786_v30  ;;  %vm1695_vm12 = vcmp.ge.u32.totalorder %v3325_v21, 429496729  ;;  %v2240_v46 = vpop.eup %2239  ;;  %v4048_v4 = vld [vmem:[#allocation18_spill] sm:$0xff] }
 0x184   : > { %2251 = vrcp.f32 %v554_v60  ;;  %v1140_v35 = vxor.u32 %v2871_v14, %v1073_v31  ;;  %v878_v42 = vadd.s32 272, %v2831_v61  ;;  %v1755_v34 = vmul.f32 %v2875_v3, %v787_v29  ;;  %v2242_v24 = vpop.eup %2241  ;;  %v558_v3 = vpop.xlane.xlu1 %557 }
 0x185   : > { %2253 = vrcp.f32 %v556_v7  ;;  %v3477_v38 = vxor.u32 %v1584_v2, %v1520_v25  ;;  %v1522_v37 = vmul.u32 2221713035, %v3457_v63  ;;  %v1818_v52 = vsel %vm1690_vm7, %v1754_v33, 0.0  ;;  %v560_v25 = vpop.xlane.xlu0 %559  ;;  %v4049_v7 = vld [vmem:[#allocation19_spill] sm:$0xff] }
 0x186   : > { %v788_v26 = vmul.f32 1.1111112, %v2240_v46  ;;  %v1204_v32 = vshrl.u32 %v1140_v35, 16  ;;  %v946_v13 = vadd.s32 %v2833_v62, %v878_v42  ;;  %1882 = vst [vmem:[%s3414_s4 + $0x38] sm:$0xff] %v1818_v52  ;;  %v1819_v27 = vsel %vm1691_vm8, %v1755_v34, 0.0 }
 0x187   : > { %v789_v59 = vmul.f32 1.1111112, %v2242_v24  ;;  %vm1696_vm13 = vcmp.ge.u32.totalorder %v3332_v44, 429496729  ;;  %v1585_v41 = vshrl.u32 %v1521_v10, 16  ;;  %v879_v28 = vadd.s32 280, %v2831_v61 }
 0x188   : > { %1883 = vst [vmem:[%s3414_s4 + $0x40] sm:$0xff] %v1819_v27  ;;  %v1756_v20 = vmul.f32 %v2880_v6, %v788_v26  ;;  %vm1697_vm14 = vcmp.ge.u32.totalorder %v3334_v0, 429496729  ;;  %2255 = vrcp.f32 %v558_v3  ;;  %v1331_v15 = vmul.u32 2146121005, %v3469_v55  ;;  %v2244_v16 = vpop.eup %2243  ;;  %v562_v18 = vpop.xlane.xlu1 %561  ;;  %v4050_v3 = vld [vmem:[#allocation20_spill] sm:$0xff] }
 0x189   : > { %v1268_v12 = vxor.u32 %v1204_v32, %v1140_v35  ;;  %v1757_v47 = vmul.f32 %v4047_v50, %v789_v59  ;;  %2257 = vrcp.f32 %v560_v25  ;;  %v1010_v39 = vmul.u32 128, %v946_v13  ;;  %v2246_v23 = vpop.eup %2245  ;;  %v564_v36 = vpop.xlane.xlu0 %563  ;;  %v4055_v0 = vld [vmem:[#allocation23_spill] sm:$0xff] }
 0x18a   : > { %v947_v56 = vadd.s32 %v2833_v62, %v879_v28  ;;  %v1820_v22 = vsel %vm1692_vm9, %v1756_v20, 0.0  ;;  %v790_v40 = vmul.f32 1.1111112, %v2244_v16  ;;  %v1586_v6 = vshrl.u32 %v1522_v37, 16 }
 0x18b   : > { %v1332_v45 = vmul.u32 2146121005, %v1268_v12  ;;  %1884 = vst [vmem:[%s3414_s4 + $0x48] sm:$0xff] %v1820_v22  ;;  %v1821_v2 = vsel %vm1693_vm10, %v1757_v47, 0.0  ;;  %v791_v63 = vmul.f32 1.1111112, %v2246_v23  ;;  %v1074_v30 = vadd.s32 %v1010_v39, %v2852_v51 }
 0x18c   : > { %vm1698_vm15 = vcmp.ge.u32.totalorder %v3343_v11, 429496729  ;;  %v1011_v31 = vmul.u32 128, %v947_v56  ;;  %1885 = vst [vmem:[%s3414_s4 + $0x50] sm:$0xff] %v1821_v2  ;;  %v1758_v1 = vmul.f32 %v4048_v4, %v790_v40  ;;  %vm1699_vm0 = vcmp.ge.u32.totalorder %v3345_v43, 429496729  ;;  %v2248_v5 = vpop.eup %2247  ;;  %v566_v32 = vpop.xlane.xlu1 %565 }
 0x18d   : > { %2259 = vrcp.f32 %v562_v18  ;;  %v3504_v29 = vxor.u32 %v1585_v41, %v1521_v10  ;;  %v1395_v60 = vshrl.u32 %v1331_v15, 15  ;;  %v1759_v55 = vmul.f32 %v4049_v7, %v791_v63  ;;  %v2250_v42 = vpop.eup %2249  ;;  %v568_v13 = vpop.xlane.xlu0 %567  ;;  %v4051_v41 = vld [vmem:[#allocation21_spill] sm:$0xff]  ;;  %v4052_v22 = vld [vmem:[#allocation64_spill] sm:$0xff]  ;;  %v4053_v18 = vld [vmem:[#allocation22_spill] sm:$0xff] }
 0x18e   : > { %2261 = vrcp.f32 %v564_v36  ;;  %v1141_v33 = vxor.u32 %v2871_v14, %v1074_v30  ;;  %v1075_v35 = vadd.s32 %v1011_v31, %v2852_v51  ;;  %v1822_v46 = vsel %vm1694_vm11, %v1758_v1, 0.0  ;;  %v4054_v36 = vld [vmem:[#allocation65_spill] sm:$0xff]  ;;  %v4057_v11 = vld [vmem:[#allocation24_spill] sm:$0xff] }
 0x18f   : > { %v792_v34 = vmul.f32 1.1111112, %v2248_v5  ;;  %v3511_v24 = vxor.u32 %v1586_v6, %v1522_v37  ;;  %v1396_v52 = vshrl.u32 %v1332_v45, 15  ;;  %1886 = vst [vmem:[%s3414_s4 + $0x58] sm:$0xff] %v1822_v46  ;;  %v1823_v10 = vsel %vm1695_vm12, %v1759_v55, 0.0 }
 0x190   : > { %v793_v26 = vmul.f32 1.1111112, %v2250_v42  ;;  %vm1700_vm1 = vcmp.ge.u32.totalorder %v3350_v8, 429496729  ;;  %v1205_v27 = vshrl.u32 %v1141_v33, 16  ;;  %v1142_v59 = vxor.u32 %v2871_v14, %v1075_v35  ;;  %1887 = vst [vmem:[%s3414_s4 + $0x60] sm:$0xff] %v1823_v10  ;;  %v570_v40 = vpop.xlane.xlu1 %569 }
 0x191   : > { %v1760_v54 = vmul.f32 %v4050_v3, %v792_v34  ;;  %vm1701_vm2 = vcmp.ge.u32.totalorder %v3352_v19, 429496729  ;;  %2263 = vrcp.f32 %v566_v32  ;;  %v3521_v37 = vxor.u32 %v1395_v60, %v1331_v15  ;;  %v2252_v25 = vpop.eup %2251  ;;  %v572_v6 = vpop.xlane.xlu0 %571  ;;  %v4056_v34 = vld [vmem:[#allocation66_spill] sm:$0xff]  ;;  %v4058_v3 = vld [vmem:[#allocation25_spill] sm:$0xff]  ;;  %v4060_v19 = vld [vmem:[#allocation27_spill] sm:$0xff] }
 0x192   : > { %v880_v21 = vadd.s32 288, %v2831_v61  ;;  %v1761_v28 = vmul.f32 %v4051_v41, %v793_v26  ;;  %2265 = vrcp.f32 %v568_v13  ;;  %v1269_v20 = vxor.u32 %v1205_v27, %v1141_v33  ;;  %v2254_v16 = vpop.eup %2253 }
 0x193   : > { %v1206_v12 = vshrl.u32 %v1142_v59, 16  ;;  %v1824_v50 = vsel %vm1696_vm13, %v1760_v54, 0.0  ;;  %v794_v47 = vmul.f32 1.1111112, %v2252_v25  ;;  %v3527_v39 = vxor.u32 %v1396_v52, %v1332_v45 }
 0x194   : > { %v948_v56 = vadd.s32 %v2833_v62, %v880_v21  ;;  %1888 = vst [vmem:[%s3414_s4 + $0x68] sm:$0xff] %v1824_v50  ;;  %v1825_v15 = vsel %vm1697_vm14, %v1761_v28, 0.0  ;;  %v795_v23 = vmul.f32 1.1111112, %v2254_v16  ;;  %vm1702_vm3 = vcmp.ge.u32.totalorder %v4052_v22, 429496729  ;;  %v574_v52 = vpop.xlane.xlu1 %573 }
 0x195   : > { %v1333_v2 = vmul.u32 2146121005, %v1269_v20  ;;  %v1270_v63 = vxor.u32 %v1206_v12, %v1142_v59  ;;  %1889 = vst [vmem:[%s3414_s4 + $0x70] sm:$0xff] %v1825_v15  ;;  %v1762_v44 = vmul.f32 %v4053_v18, %v794_v47  ;;  %vm1703_vm4 = vcmp.ge.u32.totalorder %v4054_v36, 429496729  ;;  %v2256_v31 = vpop.eup %2255  ;;  %v576_v10 = vpop.xlane.xlu0 %575  ;;  %v4061_v22 = vld [vmem:[#allocation28_spill] sm:$0xff] }
 0x196   : > { %2267 = vrcp.f32 %v570_v40  ;;  %v1523_v45 = vmul.u32 2221713035, %v3521_v37  ;;  %v1012_v30 = vmul.u32 128, %v948_v56  ;;  %v1763_v4 = vmul.f32 %v4055_v0, %v795_v23  ;;  %v2258_v5 = vpop.eup %2257  ;;  %v4059_v23 = vld [vmem:[#allocation26_spill] sm:$0xff] }
 0x197   : > { %2269 = vrcp.f32 %v572_v6  ;;  %v1397_v1 = vshrl.u32 %v1333_v2, 15  ;;  %v1334_v60 = vmul.u32 2146121005, %v1270_v63  ;;  %v1826_v7 = vsel %vm1698_vm15, %v1762_v44, 0.0 }
 0x198   : > { %v796_v55 = vmul.f32 1.1111112, %v2256_v31  ;;  %v1524_v33 = vmul.u32 2221713035, %v3527_v39  ;;  %v1076_v35 = vadd.s32 %v1012_v30, %v2852_v51  ;;  %1890 = vst [vmem:[%s3414_s4 + $0x78] sm:$0xff] %v1826_v7  ;;  %v1827_v42 = vsel %vm1699_vm0, %v1763_v4, 0.0  ;;  %v578_v47 = vpop.xlane.xlu1 %577 }
 0x199   : > { %v797_v46 = vmul.f32 1.1111112, %v2258_v5  ;;  %vm1704_vm5 = vcmp.ge.u32.totalorder %v4056_v34, 429496729  ;;  %v3547_v26 = vxor.u32 %v1397_v1, %v1333_v2  ;;  %v1398_v32 = vshrl.u32 %v1334_v60, 15  ;;  %1891 = vst [vmem:[%s3414_s4 + $0x80] sm:$0xff] %v1827_v42  ;;  %v580_v39 = vpop.xlane.xlu0 %579 }
 0x19a   : > { %v1764_v13 = vmul.f32 %v4057_v11, %v796_v55  ;;  %vm1705_vm6 = vcmp.ge.u32.totalorder %v3388_v17, 429496729  ;;  %2271 = vrcp.f32 %v574_v52  ;;  %v1143_v27 = vxor.u32 %v2871_v14, %v1076_v35  ;;  %v2260_v59 = vpop.eup %2259  ;;  %v4063_v34 = vld [vmem:[#allocation30_spill] sm:$0xff] }
 0x19b   : > { %v881_v43 = vadd.s32 296, %v2831_v61  ;;  %v1765_v54 = vmul.f32 %v4058_v3, %v797_v46  ;;  %2273 = vrcp.f32 %v576_v10  ;;  %v1587_v37 = vshrl.u32 %v1523_v45, 16  ;;  %v2262_v25 = vpop.eup %2261  ;;  %v4062_v10 = vld [vmem:[#allocation29_spill] sm:$0xff] }
 0x19c   : > { %v3555_v21 = vxor.u32 %v1398_v32, %v1334_v60  ;;  %v1828_v41 = vsel %vm1700_vm1, %v1764_v13, 0.0  ;;  %v798_v28 = vmul.f32 1.1111112, %v2260_v59  ;;  %v1207_v20 = vshrl.u32 %v1143_v27, 16  ;;  %v582_v7 = vpop.xlane.xlu1 %581 }
 0x19d   : > { %v949_v12 = vadd.s32 %v2833_v62, %v881_v43  ;;  %1892 = vst [vmem:[%s3414_s4 + $0x88] sm:$0xff] %v1828_v41  ;;  %v1829_v16 = vsel %vm1701_vm2, %v1765_v54, 0.0  ;;  %v799_v50 = vmul.f32 1.1111112, %v2262_v25  ;;  %vm1706_vm7 = vcmp.ge.u32.totalorder %v3394_v57, 429496729 }
 0x19e   : > { %v1588_v56 = vshrl.u32 %v1524_v33, 16  ;;  %v1525_v15 = vmul.u32 2221713035, %v3547_v26  ;;  %1893 = vst [vmem:[%s3414_s4 + $0x90] sm:$0xff] %v1829_v16  ;;  %v1766_v8 = vmul.f32 %v4059_v23, %v798_v28  ;;  %vm1707_vm8 = vcmp.ge.u32.totalorder %v3396_v48, 429496729  ;;  %v2264_v2 = vpop.eup %2263 }
 0x19f   : > { %2275 = vrcp.f32 %v578_v47  ;;  %v1271_v40 = vxor.u32 %v1207_v20, %v1143_v27  ;;  %v1013_v6 = vmul.u32 128, %v949_v12  ;;  %v1767_v63 = vmul.f32 %v4060_v19, %v799_v50  ;;  %v2266_v30 = vpop.eup %2265  ;;  %v4064_v47 = vld [vmem:[#allocation31_spill] sm:$0xff]  ;;  %v4065_v57 = vld [vmem:[#allocation32_spill] sm:$0xff] }
 0x1a0   : > { %2277 = vrcp.f32 %v580_v39  ;;  %v3569_v18 = vxor.u32 %v1587_v37, %v1523_v45  ;;  %v1526_v44 = vmul.u32 2221713035, %v3555_v21  ;;  %v1830_v31 = vsel %vm1702_vm3, %v1766_v8, 0.0  ;;  %v584_v45 = vpop.xlane.xlu0 %583  ;;  %v586_v25 = vpop.xlane.xlu1 %585 }
 0x1a1   : > { %v800_v0 = vmul.f32 1.1111112, %v2264_v2  ;;  %v1335_v4 = vmul.u32 2146121005, %v1271_v40  ;;  %v1077_v1 = vadd.s32 %v1013_v6, %v2852_v51  ;;  %1894 = vst [vmem:[%s3414_s4 + $0x98] sm:$0xff] %v1830_v31  ;;  %v1831_v60 = vsel %vm1703_vm4, %v1767_v63, 0.0 }
 0x1a2   : > { %v801_v5 = vmul.f32 1.1111112, %v2266_v30  ;;  %vm1708_vm9 = vcmp.ge.u32.totalorder %v3409_v9, 429496729  ;;  %v3579_v55 = vxor.u32 %v1588_v56, %v1524_v33  ;;  %v1589_v35 = vshrl.u32 %v1525_v15, 16  ;;  %1895 = vst [vmem:[%s3414_s4 + $0xa0] sm:$0xff] %v1831_v60 }
 0x1a3   : > { %v1768_v42 = vmul.f32 %v4061_v22, %v800_v0  ;;  %vm1709_vm10 = vcmp.ge.u32.totalorder %v3443_v53, 429496729  ;;  %2279 = vrcp.f32 %v582_v7  ;;  %v1399_v46 = vshrl.u32 %v1335_v4, 15  ;;  %v2268_v52 = vpop.eup %2267  ;;  %v4067_v9 = vld [vmem:[#allocation34_spill] sm:$0xff] }
 0x1a4   : > { %v1144_v36 = vxor.u32 %v2871_v14, %v1077_v1  ;;  %v1769_v32 = vmul.f32 %v4062_v10, %v801_v5  ;;  %2281 = vrcp.f32 %v584_v45  ;;  %v1590_v33 = vshrl.u32 %v1526_v44, 16  ;;  %v2270_v13 = vpop.eup %2269  ;;  %v588_v41 = vpop.xlane.xlu0 %587  ;;  %v4066_v5 = vld [vmem:[#allocation33_spill] sm:$0xff] }
 0x1a5   : > { %v882_v11 = vadd.s32 304, %v2831_v61  ;;  %v1832_v27 = vsel %vm1704_vm5, %v1768_v42, 0.0  ;;  %v802_v43 = vmul.f32 1.1111112, %v2268_v52  ;;  %v3593_v59 = vxor.u32 %v1399_v46, %v1335_v4  ;;  %v590_v31 = vpop.xlane.xlu1 %589 }
 0x1a6   : > { %v1208_v3 = vshrl.u32 %v1144_v36, 16  ;;  %1896 = vst [vmem:[%s3414_s4 + $0xa8] sm:$0xff] %v1832_v27  ;;  %v1833_v54 = vsel %vm1705_vm6, %v1769_v32, 0.0  ;;  %v803_v37 = vmul.f32 1.1111112, %v2270_v13  ;;  %v883_v20 = vadd.s32 312, %v2831_v61 }
 0x1a7   : > { %vm1710_vm11 = vcmp.ge.u32.totalorder %v3454_v49, 429496729  ;;  %v950_v28 = vadd.s32 %v2833_v62, %v882_v11  ;;  %1897 = vst [vmem:[%s3414_s4 + $0xb0] sm:$0xff] %v1833_v54  ;;  %v1770_v12 = vmul.f32 %v4063_v34, %v802_v43  ;;  %vm1711_vm12 = vcmp.ge.u32.totalorder %v3461_v58, 429496729  ;;  %v2272_v50 = vpop.eup %2271 }
 0x1a8   : > { %2283 = vrcp.f32 %v586_v25  ;;  %v1527_v16 = vmul.u32 2221713035, %v3593_v59  ;;  %v1272_v17 = vxor.u32 %v1208_v3, %v1144_v36  ;;  %v1771_v39 = vmul.f32 %v4064_v47, %v803_v37  ;;  %v2274_v8 = vpop.eup %2273  ;;  %v592_v0 = vpop.xlane.xlu0 %591  ;;  %v4068_v3 = vld [vmem:[#allocation35_spill] sm:$0xff] }
 0x1a9   : > { %2285 = vrcp.f32 %v588_v41  ;;  %v1014_v56 = vmul.u32 128, %v950_v28  ;;  %v951_v23 = vadd.s32 %v2833_v62, %v883_v20  ;;  %v1834_v40 = vsel %vm1706_vm7, %v1770_v12, 0.0  ;;  %v594_v10 = vpop.xlane.xlu1 %593 }
 0x1aa   : > { %v804_v6 = vmul.f32 1.1111112, %v2272_v50  ;;  %v3611_v2 = vxor.u32 %v1589_v35, %v1525_v15  ;;  %v1336_v19 = vmul.u32 2146121005, %v1272_v17  ;;  %1898 = vst [vmem:[%s3414_s4 + $0xb8] sm:$0xff] %v1834_v40  ;;  %v1835_v63 = vsel %vm1707_vm8, %v1771_v39, 0.0 }
 0x1ab   : > { %v805_v30 = vmul.f32 1.1111112, %v2274_v8  ;;  %vm1712_vm13 = vcmp.ge.u32.totalorder %v3477_v38, 429496729  ;;  %v1078_v4 = vadd.s32 %v1014_v56, %v2852_v51  ;;  %v1015_v1 = vmul.u32 128, %v951_v23  ;;  %1899 = vst [vmem:[%s3414_s4 + $0xc0] sm:$0xff] %v1835_v63 }
 0x1ac   : > { %v1772_v60 = vmul.f32 %v4065_v57, %v804_v6  ;;  %vm1713_vm14 = vcmp.ge.u32.totalorder %v3504_v29, 429496729  ;;  %2287 = vrcp.f32 %v590_v31  ;;  %v3623_v26 = vxor.u32 %v1590_v33, %v1526_v44  ;;  %v2276_v15 = vpop.eup %2275  ;;  %v596_v32 = vpop.xlane.xlu0 %595  ;;  %v4069_v8 = vld [vmem:[#allocation36_spill] sm:$0xff] }
 0x1ad   : > { %v1400_v48 = vshrl.u32 %v1336_v19, 15  ;;  %v1773_v7 = vmul.f32 %v4066_v5, %v805_v30  ;;  %2289 = vrcp.f32 %v592_v0  ;;  %v1145_v45 = vxor.u32 %v2871_v14, %v1078_v4  ;;  %v2278_v22 = vpop.eup %2277  ;;  %v598_v47 = vpop.xlane.xlu1 %597 }
 0x1ae   : > { %v1079_v35 = vadd.s32 %v1015_v1, %v2852_v51  ;;  %v1836_v42 = vsel %vm1708_vm9, %v1772_v60, 0.0  ;;  %v806_v46 = vmul.f32 1.1111112, %v2276_v15  ;;  %v1591_v21 = vshrl.u32 %v1527_v16, 16 }
 0x1af   : > { %v1464_v44 = vxor.u32 %v1400_v48, %v1336_v19  ;;  %1900 = vst [vmem:[%s3414_s4 + $0xc8] sm:$0xff] %v1836_v42  ;;  %v1837_v36 = vsel %vm1709_vm10, %v1773_v7, 0.0  ;;  %v807_v52 = vmul.f32 1.1111112, %v2278_v22  ;;  %vm1714_vm15 = vcmp.ge.u32.totalorder %v3511_v24, 429496729 }
 0x1b0   : > { %v1209_v33 = vshrl.u32 %v1145_v45, 16  ;;  %v1146_v11 = vxor.u32 %v2871_v14, %v1079_v35  ;;  %1901 = vst [vmem:[%s3414_s4 + $0xd0] sm:$0xff] %v1837_v36  ;;  %v1774_v13 = vmul.f32 %v4067_v9, %v806_v46  ;;  %vm1715_vm0 = vcmp.ge.u32.totalorder %v3569_v18, 429496729  ;;  %v2280_v53 = vpop.eup %2279  ;;  %v600_v56 = vpop.xlane.xlu0 %599  ;;  %v4070_v19 = vld [vmem:[#allocation37_spill] sm:$0xff]  ;;  %v4072_v42 = vld [vmem:[#allocation39_spill] sm:$0xff] }
 0x1b1   : > { %2291 = vrcp.f32 %v594_v10  ;;  %v1528_v27 = vmul.u32 2221713035, %v1464_v44  ;;  %v884_v43 = vadd.s32 320, %v2831_v61  ;;  %v1775_v54 = vmul.f32 %v4068_v3, %v807_v52  ;;  %v2282_v41 = vpop.eup %2281  ;;  %v602_v5 = vpop.xlane.xlu1 %601 }
 0x1b2   : > { %2293 = vrcp.f32 %v596_v32  ;;  %v1273_v37 = vxor.u32 %v1209_v33, %v1145_v45  ;;  %v1210_v25 = vshrl.u32 %v1146_v11, 16  ;;  %v1838_v28 = vsel %vm1710_vm11, %v1774_v13, 0.0  ;;  %v4071_v45 = vld [vmem:[#allocation38_spill] sm:$0xff] }
 0x1b3   : > { %v808_v20 = vmul.f32 1.1111112, %v2280_v53  ;;  %v1592_v34 = vshrl.u32 %v1528_v27, 16  ;;  %v952_v12 = vadd.s32 %v2833_v62, %v884_v43  ;;  %1902 = vst [vmem:[%s3414_s4 + $0xd8] sm:$0xff] %v1838_v28  ;;  %v1839_v17 = vsel %vm1711_vm12, %v1775_v54, 0.0  ;;  %v4073_v53 = vld [vmem:[#allocation40_spill] sm:$0xff] }
 0x1b4   : > { %v809_v50 = vmul.f32 1.1111112, %v2282_v41  ;;  %vm1716_vm1 = vcmp.ge.u32.totalorder %v3579_v55, 429496729  ;;  %v1337_v39 = vmul.u32 2146121005, %v1273_v37  ;;  %v1274_v23 = vxor.u32 %v1210_v25, %v1146_v11  ;;  %v604_v7 = vpop.xlane.xlu0 %603 }
 0x1b5   : > { %1903 = vst [vmem:[%s3414_s4 + $0xe0] sm:$0xff] %v1839_v17  ;;  %v1776_v49 = vmul.f32 %v4069_v8, %v808_v20  ;;  %vm1717_vm2 = vcmp.ge.u32.totalorder %v3611_v2, 429496729  ;;  %v3654_v40 = vxor.u32 %v1591_v21, %v1527_v16  ;;  %2295 = vrcp.f32 %v598_v47  ;;  %v2284_v6 = vpop.eup %2283  ;;  %v606_v43 = vpop.xlane.xlu1 %605  ;;  %v4074_v25 = vld [vmem:[#allocation41_spill] sm:$0xff] }
 0x1b6   : > { %v1016_v58 = vmul.u32 128, %v952_v12  ;;  %v1777_v63 = vmul.f32 %v4070_v19, %v809_v50  ;;  %v1401_v30 = vshrl.u32 %v1337_v39, 15  ;;  %2297 = vrcp.f32 %v600_v56  ;;  %v2286_v0 = vpop.eup %2285 }
 0x1b7   : > { %v1338_v31 = vmul.u32 2146121005, %v1274_v23  ;;  %v1840_v4 = vsel %vm1712_vm13, %v1776_v49, 0.0  ;;  %v810_v1 = vmul.f32 1.1111112, %v2284_v6  ;;  %v3659_v57 = vxor.u32 %v1592_v34, %v1528_v27  ;;  %v4075_v49 = vld [vmem:[#allocation42_spill] sm:$0xff] }
 0x1b8   : > { %v1080_v59 = vadd.s32 %v1016_v58, %v2852_v51  ;;  %1904 = vst [vmem:[%s3414_s4 + $0xe8] sm:$0xff] %v1840_v4  ;;  %v1841_v16 = vsel %vm1713_vm14, %v1777_v63, 0.0  ;;  %v811_v60 = vmul.f32 1.1111112, %v2286_v0  ;;  %vm1718_vm3 = vcmp.ge.u32.totalorder %v3623_v26, 429496729 }
 0x1b9   : > { %v1465_v48 = vxor.u32 %v1401_v30, %v1337_v39  ;;  %v1402_v15 = vshrl.u32 %v1338_v31, 15  ;;  %1905 = vst [vmem:[%s3414_s4 + $0xf0] sm:$0xff] %v1841_v16  ;;  %v1778_v38 = vmul.f32 %v4071_v45, %v810_v1  ;;  %vm1719_vm4 = vcmp.ge.u32.totalorder %v3654_v40, 429496729  ;;  %v2288_v29 = vpop.eup %2287  ;;  %v608_v39 = vpop.xlane.xlu0 %607  ;;  %v4076_v30 = vld [vmem:[#allocation43_spill] sm:$0xff]  ;;  %v4077_v45 = vld [vmem:[#allocation44_spill] sm:$0xff] }
 0x1ba   : > { %2299 = vrcp.f32 %v602_v5  ;;  %v1147_v35 = vxor.u32 %v2871_v14, %v1080_v59  ;;  %v885_v22 = vadd.s32 328, %v2831_v61  ;;  %v1779_v46 = vmul.f32 %v4072_v42, %v811_v60  ;;  %v2290_v36 = vpop.eup %2289  ;;  %v610_v0 = vpop.xlane.xlu1 %609 }
 0x1bb   : > { %v1529_v21 = vmul.u32 2221713035, %v1465_v48  ;;  %v1466_v44 = vxor.u32 %v1402_v15, %v1338_v31  ;;  %2301 = vrcp.f32 %v604_v7  ;;  %v1842_v52 = vsel %vm1714_vm15, %v1778_v38, 0.0 }
 0x1bc   : > { %v812_v10 = vmul.f32 1.1111112, %v2288_v29  ;;  %v1211_v32 = vshrl.u32 %v1147_v35, 16  ;;  %v953_v33 = vadd.s32 %v2833_v62, %v885_v22  ;;  %1906 = vst [vmem:[%s3414_s4 + $0xf8] sm:$0xff] %v1842_v52  ;;  %v1843_v11 = vsel %vm1715_vm0, %v1779_v46, 0.0  ;;  %v4078_v29 = vld [vmem:[#allocation45_spill] sm:$0xff] }
 0x1bd   : > { %v813_v9 = vmul.f32 1.1111112, %v2290_v36  ;;  %vm1720_vm5 = vcmp.ge.u32.totalorder %v3659_v57, 429496729  ;;  %v1593_v13 = vshrl.u32 %v1529_v21, 16  ;;  %1907 = vst [vmem:[%s3414_s4 + $0x100] sm:$0xff] %v1843_v11  ;;  %2303 = vrcp.f32 %v606_v43 }
 0x1be   : > { %v1530_v27 = vmul.u32 2221713035, %v1466_v44  ;;  %v1780_v3 = vmul.f32 %v4073_v53, %v812_v10  ;;  %v1275_v24 = vxor.u32 %v1211_v32, %v1147_v35  ;;  %v1017_v54 = vmul.u32 128, %v953_v33  ;;  %v2292_v37 = vpop.eup %2291  ;;  %v612_v44 = vpop.xlane.xlu0 %611  ;;  %v4079_v43 = vld [vmem:[#allocation46_spill] sm:$0xff] }
 0x1bf   : > { %v1781_v41 = vmul.f32 %v4074_v25, %v813_v9  ;;  %v1657_v28 = vxor.u32 %v1593_v13, %v1529_v21  ;;  %v886_v20 = vadd.s32 336, %v2831_v61  ;;  %v2294_v34 = vpop.eup %2293  ;;  %v814_v17 = vmul.f32 1.1111112, %v2292_v37  ;;  %v4080_v37 = vld [vmem:[#allocation10_spill] sm:$0xff] }
 0x1c0   : > { %v1594_v18 = vshrl.u32 %v1530_v27, 16  ;;  %v1844_v12 = vsel %vm1716_vm1, %v1780_v3, 0.0  ;;  %v1339_v50 = vmul.u32 2146121005, %v1275_v24  ;;  %v1081_v47 = vadd.s32 %v1017_v54, %v2852_v51 }
 0x1c1   : > { %1908 = vst [vmem:[%s3414_s4 + $0x108] sm:$0xff] %v1844_v12  ;;  %v1845_v56 = vsel %vm1717_vm2, %v1781_v41, 0.0  ;;  %v815_v23 = vmul.f32 1.1111112, %v2294_v34  ;;  %vm1721_vm6 = vcmp.ge.u32.totalorder %v1657_v28, 429496729  ;;  %v1782_v58 = vmul.f32 %v4075_v49, %v814_v17 }
 0x1c2   : > { %v1658_v8 = vxor.u32 %v1594_v18, %v1530_v27  ;;  %1909 = vst [vmem:[%s3414_s4 + $0x110] sm:$0xff] %v1845_v56  ;;  %v1403_v6 = vshrl.u32 %v1339_v50, 15  ;;  %v1148_v55 = vxor.u32 %v2871_v14, %v1081_v47  ;;  %v954_v19 = vadd.s32 %v2833_v62, %v886_v20  ;;  %v2296_v63 = vpop.eup %2295  ;;  %v614_v18 = vpop.xlane.xlu1 %613  ;;  %v4081_v49 = vld [vmem:[#allocation47_spill] sm:$0xff] }
 0x1c3   : > { %v1783_v31 = vmul.f32 %v4076_v30, %v815_v23  ;;  %2305 = vrcp.f32 %v608_v39  ;;  %v887_v2 = vadd.s32 344, %v2831_v61  ;;  %v2298_v4 = vpop.eup %2297  ;;  %v1846_v1 = vsel %vm1718_vm3, %v1782_v58, 0.0  ;;  %v616_v56 = vpop.xlane.xlu0 %615 }
 0x1c4   : > { %vm1722_vm7 = vcmp.ge.u32.totalorder %v1658_v8, 429496729  ;;  %v816_v59 = vmul.f32 1.1111112, %v2296_v63  ;;  %v1467_v16 = vxor.u32 %v1403_v6, %v1339_v50  ;;  %v1212_v60 = vshrl.u32 %v1148_v55, 16  ;;  %1910 = vst [vmem:[%s3414_s4 + $0x118] sm:$0xff] %v1846_v1 }
 0x1c5   : > { %v1847_v48 = vsel %vm1719_vm4, %v1783_v31, 0.0  ;;  %v817_v15 = vmul.f32 1.1111112, %v2298_v4  ;;  %v1018_v5 = vmul.u32 128, %v954_v19  ;;  %v955_v7 = vadd.s32 %v2833_v62, %v887_v2 }
 0x1c6   : > { %1911 = vst [vmem:[%s3414_s4 + $0x120] sm:$0xff] %v1847_v48  ;;  %v1784_v38 = vmul.f32 %v4077_v45, %v816_v59  ;;  %v1531_v35 = vmul.u32 2221713035, %v1467_v16  ;;  %v1276_v22 = vxor.u32 %v1212_v60, %v1148_v55  ;;  %2307 = vrcp.f32 %v610_v0 }
 0x1c7   : > { %v2300_v26 = vpop.eup %2299  ;;  %v1785_v42 = vmul.f32 %v4078_v29, %v817_v15  ;;  %v1082_v46 = vadd.s32 %v1018_v5, %v2852_v51  ;;  %v1019_v21 = vmul.u32 128, %v955_v7  ;;  %v888_v40 = vadd.s32 352, %v2831_v61 }
 0x1c8   : > { %v2302_v36 = vpop.eup %2301  ;;  %v1848_v52 = vsel %vm1720_vm5, %v1784_v38, 0.0  ;;  %v818_v10 = vmul.f32 1.1111112, %v2300_v26  ;;  %v1595_v32 = vshrl.u32 %v1531_v35, 16  ;;  %v1340_v33 = vmul.u32 2146121005, %v1276_v22 }
 0x1c9   : > { %1912 = vst [vmem:[%s3414_s4 + $0x128] sm:$0xff] %v1848_v52  ;;  %v1849_v11 = vsel %vm1721_vm6, %v1785_v42, 0.0  ;;  %v819_v9 = vmul.f32 1.1111112, %v2302_v36  ;;  %v1149_v13 = vxor.u32 %v2871_v14, %v1082_v46  ;;  %v1083_v27 = vadd.s32 %v1019_v21, %v2852_v51  ;;  %v4082_v38 = vld [vmem:[#allocation11_spill] sm:$0xff]  ;;  %v618_v21 = vpop.xlane.xlu1 %617 }
 0x1ca   : > { %1913 = vst [vmem:[%s3414_s4 + $0x130] sm:$0xff] %v1849_v11  ;;  %v1786_v53 = vmul.f32 %v4079_v43, %v818_v10  ;;  %v1659_v3 = vxor.u32 %v1595_v32, %v1531_v35  ;;  %v1404_v24 = vshrl.u32 %v1340_v33, 15  ;;  %v956_v57 = vadd.s32 %v2833_v62, %v888_v40  ;;  %v2304_v54 = vpop.eup %2303  ;;  %v4083_v10 = vld [vmem:[#allocation12_spill] sm:$0xff] }
 0x1cb   : > { %v1787_v25 = vmul.f32 %v4080_v37, %v819_v9  ;;  %v1213_v41 = vshrl.u32 %v1149_v13, 16  ;;  %v1150_v28 = vxor.u32 %v2871_v14, %v1083_v27  ;;  %2309 = vrcp.f32 %v612_v44 }
 0x1cc   : > { %v1850_v20 = vsel %vm1722_vm7, %v1786_v53, 0.0  ;;  %vm1723_vm8 = vcmp.ge.u32.totalorder %v1659_v3, 429496729  ;;  %v1468_v34 = vxor.u32 %v1404_v24, %v1340_v33  ;;  %v820_v12 = vmul.f32 1.1111112, %v2304_v54 }
 0x1cd   : > { %1914 = vst [vmem:[%s3414_s4 + $0x138] sm:$0xff] %v1850_v20  ;;  %v1851_v17 = vsel %vm1723_vm8, %v1787_v25, 0.0  ;;  %v1277_v50 = vxor.u32 %v1213_v41, %v1149_v13  ;;  %v1214_v47 = vshrl.u32 %v1150_v28, 16  ;;  %v1020_v39 = vmul.u32 128, %v956_v57 }
 0x1ce   : > { %1915 = vst [vmem:[%s3414_s4 + $0x140] sm:$0xff] %v1851_v17  ;;  %v1532_v23 = vmul.u32 2221713035, %v1468_v34  ;;  %v1788_v58 = vmul.f32 %v4081_v49, %v820_v12  ;;  %v889_v6 = vadd.s32 360, %v2831_v61  ;;  %2311 = vrcp.f32 %v614_v18 }
 0x1cf   : > { %v1341_v55 = vmul.u32 2146121005, %v1277_v50  ;;  %v1278_v19 = vxor.u32 %v1214_v47, %v1150_v28  ;;  %v1084_v8 = vadd.s32 %v1020_v39, %v2852_v51  ;;  %v890_v63 = vadd.s32 368, %v2831_v61  ;;  %v4084_v39 = vld [vmem:[#allocation13_spill] sm:$0xff] }
 0x1d0   : > { %v2306_v30 = vpop.eup %2305  ;;  %v1596_v31 = vshrl.u32 %v1532_v23, 16  ;;  %v957_v2 = vadd.s32 %v2833_v62, %v889_v6  ;;  %2313 = vrcp.f32 %v616_v56  ;;  %v891_v0 = vadd.s32 376, %v2831_v61 }
 0x1d1   : > { %v1405_v4 = vshrl.u32 %v1341_v55, 15  ;;  %v821_v1 = vmul.f32 1.1111112, %v2306_v30  ;;  %v1342_v59 = vmul.u32 2146121005, %v1278_v19  ;;  %v1151_v16 = vxor.u32 %v2871_v14, %v1084_v8  ;;  %v620_v30 = vpop.xlane.xlu0 %619 }
 0x1d2   : > { %v1660_v60 = vxor.u32 %v1596_v31, %v1532_v23  ;;  %v1021_v48 = vmul.u32 128, %v957_v2  ;;  %v958_v15 = vadd.s32 %v2833_v62, %v890_v63  ;;  %v959_v5 = vadd.s32 %v2833_v62, %v891_v0  ;;  %v4085_v0 = vld [vmem:[#allocation14_spill] sm:$0xff] }
 0x1d3   : > { %v2308_v7 = vpop.eup %2307  ;;  %v1469_v45 = vxor.u32 %v1405_v4, %v1341_v55  ;;  %v1789_v35 = vmul.f32 %v4082_v38, %v821_v1  ;;  %v1406_v22 = vshrl.u32 %v1342_v59, 15  ;;  %v1215_v26 = vshrl.u32 %v1151_v16, 16 }
 0x1d4   : > { %vm1724_vm9 = vcmp.ge.u32.totalorder %v1660_v60, 429496729  ;;  %v822_v29 = vmul.f32 1.1111112, %v2308_v7  ;;  %v1085_v42 = vadd.s32 %v1021_v48, %v2852_v51  ;;  %v1022_v46 = vmul.u32 128, %v958_v15  ;;  %v622_v15 = vpop.xlane.xlu1 %621 }
 0x1d5   : > { %v1852_v40 = vsel %vm1724_vm9, %v1788_v58, 0.0  ;;  %v1533_v44 = vmul.u32 2221713035, %v1469_v45  ;;  %v1470_v36 = vxor.u32 %v1406_v22, %v1342_v59  ;;  %v1279_v52 = vxor.u32 %v1215_v26, %v1151_v16 }
 0x1d6   : > { %1916 = vst [vmem:[%s3414_s4 + $0x148] sm:$0xff] %v1852_v40  ;;  %v1790_v32 = vmul.f32 %v4083_v10, %v822_v29  ;;  %v1152_v33 = vxor.u32 %v2871_v14, %v1085_v42  ;;  %v1086_v11 = vadd.s32 %v1022_v46, %v2852_v51  ;;  %v1023_v9 = vmul.u32 128, %v959_v5 }
 0x1d7   : > { %v1597_v13 = vshrl.u32 %v1533_v44, 16  ;;  %v1534_v27 = vmul.u32 2221713035, %v1470_v36  ;;  %v1343_v43 = vmul.u32 2146121005, %v1279_v52  ;;  %2315 = vrcp.f32 %v618_v21  ;;  %v624_v52 = vpop.xlane.xlu0 %623 }
 0x1d8   : > { %v2310_v53 = vpop.eup %2309  ;;  %v1216_v3 = vshrl.u32 %v1152_v33, 16  ;;  %v1153_v24 = vxor.u32 %v2871_v14, %v1086_v11  ;;  %v1087_v57 = vadd.s32 %v1023_v9, %v2852_v51  ;;  %v892_v54 = vadd.s32 384, %v2831_v61 }
 0x1d9   : > { %v1661_v37 = vxor.u32 %v1597_v13, %v1533_v44  ;;  %v1598_v25 = vshrl.u32 %v1534_v27, 16  ;;  %v1407_v41 = vshrl.u32 %v1343_v43, 15  ;;  %v823_v28 = vmul.f32 1.1111112, %v2310_v53 }
 0x1da   : > { %v1280_v18 = vxor.u32 %v1216_v3, %v1152_v33  ;;  %v1217_v20 = vshrl.u32 %v1153_v24, 16  ;;  %v1154_v34 = vxor.u32 %v2871_v14, %v1087_v57  ;;  %v960_v12 = vadd.s32 %v2833_v62, %v892_v54 }
 0x1db   : > { %v2312_v17 = vpop.eup %2311  ;;  %vm1725_vm10 = vcmp.ge.u32.totalorder %v1661_v37, 429496729  ;;  %v1662_v50 = vxor.u32 %v1598_v25, %v1534_v27  ;;  %v1471_v47 = vxor.u32 %v1407_v41, %v1343_v43  ;;  %v1791_v56 = vmul.f32 %v4084_v39, %v823_v28  ;;  %v4087_v37 = vld [vmem:[#allocation16_spill] sm:$0xff] }
 0x1dc   : > { %v1853_v23 = vsel %vm1725_vm10, %v1789_v35, 0.0  ;;  %v1344_v49 = vmul.u32 2146121005, %v1280_v18  ;;  %v824_v58 = vmul.f32 1.1111112, %v2312_v17  ;;  %v1281_v6 = vxor.u32 %v1217_v20, %v1153_v24  ;;  %v4086_v35 = vld [vmem:[#allocation15_spill] sm:$0xff]  ;;  %v626_v18 = vpop.xlane.xlu1 %625 }
 0x1dd   : > { %v2314_v55 = vpop.eup %2313  ;;  %1917 = vst [vmem:[%s3414_s4 + $0x150] sm:$0xff] %v1853_v23  ;;  %vm1726_vm11 = vcmp.ge.u32.totalorder %v1662_v50, 429496729  ;;  %v1535_v19 = vmul.u32 2221713035, %v1471_v47  ;;  %v1218_v8 = vshrl.u32 %v1154_v34, 16  ;;  %2317 = vrcp.f32 %v620_v30 }
 0x1de   : > { %v1024_v63 = vmul.u32 128, %v960_v12  ;;  %v1854_v31 = vsel %vm1726_vm11, %v1790_v32, 0.0  ;;  %v1408_v2 = vshrl.u32 %v1344_v49, 15  ;;  %v1792_v4 = vmul.f32 %v4085_v0, %v824_v58 }
 0x1df   : > { %v1345_v1 = vmul.u32 2146121005, %v1281_v6  ;;  %1918 = vst [vmem:[%s3414_s4 + $0x158] sm:$0xff] %v1854_v31  ;;  %v1599_v59 = vshrl.u32 %v1535_v19, 16  ;;  %v825_v16 = vmul.f32 1.1111112, %v2314_v55  ;;  %v1282_v60 = vxor.u32 %v1218_v8, %v1154_v34 }
 0x1e0   : > { %v1088_v48 = vadd.s32 %v1024_v63, %v2852_v51  ;;  %v1472_v5 = vxor.u32 %v1408_v2, %v1344_v49  ;;  %v893_v45 = vadd.s32 392, %v2831_v61  ;;  %2319 = vrcp.f32 %v622_v15 }
 0x1e1   : > { %v1409_v7 = vshrl.u32 %v1345_v1, 15  ;;  %v1663_v38 = vxor.u32 %v1599_v59, %v1535_v19  ;;  %v1793_v22 = vmul.f32 %v4086_v35, %v825_v16  ;;  %v1346_v26 = vmul.u32 2146121005, %v1282_v60  ;;  %v4088_v35 = vld [vmem:[#allocation48_spill] sm:$0xff] }
 0x1e2   : > { %v1155_v29 = vxor.u32 %v2871_v14, %v1088_v48  ;;  %v1536_v42 = vmul.u32 2221713035, %v1472_v5  ;;  %v961_v21 = vadd.s32 %v2833_v62, %v893_v45  ;;  %v894_v36 = vadd.s32 400, %v2831_v61 }
 0x1e3   : > { %v1473_v46 = vxor.u32 %v1409_v7, %v1345_v1  ;;  %vm1727_vm12 = vcmp.ge.u32.totalorder %v1663_v38, 429496729  ;;  %v1410_v40 = vshrl.u32 %v1346_v26, 15  ;;  %2321 = vrcp.f32 %v624_v52  ;;  %v630_v38 = vpop.xlane.xlu1 %629 }
 0x1e4   : > { %v1219_v44 = vshrl.u32 %v1155_v29, 16  ;;  %v2316_v10 = vpop.eup %2315  ;;  %v1855_v32 = vsel %vm1727_vm12, %v1791_v56, 0.0  ;;  %v1600_v33 = vshrl.u32 %v1536_v42, 16  ;;  %v1025_v9 = vmul.u32 128, %v961_v21  ;;  %v628_v56 = vpop.xlane.xlu0 %627 }
 0x1e5   : > { %v1537_v11 = vmul.u32 2221713035, %v1473_v46  ;;  %1919 = vst [vmem:[%s3414_s4 + $0x160] sm:$0xff] %v1855_v32  ;;  %v1474_v13 = vxor.u32 %v1410_v40, %v1346_v26  ;;  %v826_v27 = vmul.f32 1.1111112, %v2316_v10  ;;  %v962_v53 = vadd.s32 %v2833_v62, %v894_v36 }
 0x1e6   : > { %v1283_v43 = vxor.u32 %v1219_v44, %v1155_v29  ;;  %v1664_v3 = vxor.u32 %v1600_v33, %v1536_v42  ;;  %v1089_v57 = vadd.s32 %v1025_v9, %v2852_v51  ;;  %v895_v28 = vadd.s32 408, %v2831_v61 }
 0x1e7   : > { %v1601_v24 = vshrl.u32 %v1537_v11, 16  ;;  %v1538_v54 = vmul.u32 2221713035, %v1474_v13  ;;  %v1794_v25 = vmul.f32 %v4087_v37, %v826_v27  ;;  %v1026_v12 = vmul.u32 128, %v962_v53 }
 0x1e8   : > { %v1347_v41 = vmul.u32 2146121005, %v1283_v43  ;;  %vm1728_vm13 = vcmp.ge.u32.totalorder %v1664_v3, 429496729  ;;  %v1156_v34 = vxor.u32 %v2871_v14, %v1089_v57  ;;  %v963_v39 = vadd.s32 %v2833_v62, %v895_v28  ;;  %v632_v9 = vpop.xlane.xlu0 %631  ;;  %v4089_v43 = vld [vmem:[#allocation49_spill] sm:$0xff] }
 0x1e9   : > { %v1665_v20 = vxor.u32 %v1601_v24, %v1537_v11  ;;  %v1856_v17 = vsel %vm1728_vm13, %v1792_v4, 0.0  ;;  %v1602_v50 = vshrl.u32 %v1538_v54, 16  ;;  %v1090_v49 = vadd.s32 %v1026_v12, %v2852_v51 }
 0x1ea   : > { %v1411_v47 = vshrl.u32 %v1347_v41, 15  ;;  %1920 = vst [vmem:[%s3414_s4 + $0x168] sm:$0xff] %v1856_v17  ;;  %v1220_v23 = vshrl.u32 %v1156_v34, 16  ;;  %2323 = vrcp.f32 %v626_v18  ;;  %v1027_v19 = vmul.u32 128, %v963_v39  ;;  %v2318_v31 = vpop.eup %2317 }
 0x1eb   : > { %vm1729_vm14 = vcmp.ge.u32.totalorder %v1665_v20, 429496729  ;;  %v1666_v6 = vxor.u32 %v1602_v50, %v1538_v54  ;;  %v1157_v63 = vxor.u32 %v2871_v14, %v1090_v49  ;;  %v896_v30 = vadd.s32 416, %v2831_v61 }
 0x1ec   : > { %v1857_v58 = vsel %vm1729_vm14, %v1793_v22, 0.0  ;;  %v1475_v55 = vxor.u32 %v1411_v47, %v1347_v41  ;;  %v1284_v8 = vxor.u32 %v1220_v23, %v1156_v34  ;;  %2325 = vrcp.f32 %v628_v56 }
 0x1ed   : > { %1921 = vst [vmem:[%s3414_s4 + $0x170] sm:$0xff] %v1857_v58  ;;  %vm1730_vm15 = vcmp.ge.u32.totalorder %v1666_v6, 429496729  ;;  %v1091_v0 = vadd.s32 %v1027_v19, %v2852_v51  ;;  %v897_v4 = vadd.s32 424, %v2831_v61  ;;  %v827_v59 = vmul.f32 1.1111112, %v2318_v31  ;;  %v2320_v48 = vpop.eup %2319 }
 0x1ee   : > { %v1539_v2 = vmul.u32 2221713035, %v1475_v55  ;;  %v1858_v1 = vsel %vm1730_vm15, %v1794_v25, 0.0  ;;  %v1348_v16 = vmul.u32 2146121005, %v1284_v8  ;;  %v1221_v60 = vshrl.u32 %v1157_v63, 16 }
 0x1ef   : > { %1922 = vst [vmem:[%s3414_s4 + $0x178] sm:$0xff] %v1858_v1  ;;  %v1158_v5 = vxor.u32 %v2871_v14, %v1091_v0  ;;  %v964_v7 = vadd.s32 %v2833_v62, %v896_v30  ;;  %v965_v45 = vadd.s32 %v2833_v62, %v897_v4  ;;  %v1795_v22 = vmul.f32 %v4088_v35, %v827_v59  ;;  %v4090_v8 = vld [vmem:[#allocation50_spill] sm:$0xff]  ;;  %v4091_v30 = vld [vmem:[#allocation51_spill] sm:$0xff] }
 0x1f0   : > { %v1603_v15 = vshrl.u32 %v1539_v2, 16  ;;  %v1412_v26 = vshrl.u32 %v1348_v16, 15  ;;  %v828_v29 = vmul.f32 1.1111112, %v2320_v48  ;;  %v1285_v42 = vxor.u32 %v1221_v60, %v1157_v63  ;;  %v2322_v10 = vpop.eup %2321 }
 0x1f1   : > { %v1222_v21 = vshrl.u32 %v1158_v5, 16  ;;  %v1028_v40 = vmul.u32 128, %v964_v7  ;;  %v1029_v44 = vmul.u32 128, %v965_v45  ;;  %2327 = vrcp.f32 %v630_v38 }
 0x1f2   : > { %v1667_v46 = vxor.u32 %v1603_v15, %v1539_v2  ;;  %v1476_v36 = vxor.u32 %v1412_v26, %v1348_v16  ;;  %v1349_v52 = vmul.u32 2146121005, %v1285_v42  ;;  %v1796_v53 = vmul.f32 %v4089_v43, %v828_v29  ;;  %v634_v2 = vpop.xlane.xlu1 %633  ;;  %v636_v26 = vpop.xlane.xlu0 %635 }
 0x1f3   : > { %v1286_v32 = vxor.u32 %v1222_v21, %v1158_v5  ;;  %v1092_v33 = vadd.s32 %v1028_v40, %v2852_v51  ;;  %v1093_v11 = vadd.s32 %v1029_v44, %v2852_v51  ;;  %v898_v37 = vadd.s32 432, %v2831_v61 }
 0x1f4   : > { %vm1731_vm0 = vcmp.ge.u32.totalorder %v1667_v46, 429496729  ;;  %v1540_v27 = vmul.u32 2221713035, %v1476_v36  ;;  %v1413_v3 = vshrl.u32 %v1349_v52, 15  ;;  %2329 = vrcp.f32 %v632_v9 }
 0x1f5   : > { %v1859_v13 = vsel %vm1731_vm0, %v1795_v22, 0.0  ;;  %v1350_v24 = vmul.u32 2146121005, %v1286_v32  ;;  %v1159_v57 = vxor.u32 %v2871_v14, %v1092_v33  ;;  %v1160_v54 = vxor.u32 %v2871_v14, %v1093_v11 }
 0x1f6   : > { %1923 = vst [vmem:[%s3414_s4 + $0x180] sm:$0xff] %v1859_v13  ;;  %v1604_v25 = vshrl.u32 %v1540_v27, 16  ;;  %v1477_v41 = vxor.u32 %v1413_v3, %v1349_v52  ;;  %v829_v28 = vmul.f32 1.1111112, %v2322_v10  ;;  %v966_v17 = vadd.s32 %v2833_v62, %v898_v37  ;;  %v638_v11 = vpop.xlane.xlu1 %637  ;;  %v4092_v13 = vld [vmem:[#allocation52_spill] sm:$0xff] }
 0x1f7   : > { %v2324_v18 = vpop.eup %2323  ;;  %v1414_v20 = vshrl.u32 %v1350_v24, 15  ;;  %v1223_v34 = vshrl.u32 %v1159_v57, 16  ;;  %v1224_v12 = vshrl.u32 %v1160_v54, 16  ;;  %v899_v56 = vadd.s32 440, %v2831_v61 }
 0x1f8   : > { %v1668_v50 = vxor.u32 %v1604_v25, %v1540_v27  ;;  %v1541_v47 = vmul.u32 2221713035, %v1477_v41  ;;  %v830_v39 = vmul.f32 1.1111112, %v2324_v18  ;;  %v1030_v55 = vmul.u32 128, %v966_v17  ;;  %v4093_v41 = vld [vmem:[#allocation53_spill] sm:$0xff] }
 0x1f9   : > { %v2326_v23 = vpop.eup %2325  ;;  %v1478_v49 = vxor.u32 %v1414_v20, %v1350_v24  ;;  %v1287_v58 = vxor.u32 %v1223_v34, %v1159_v57  ;;  %v1288_v6 = vxor.u32 %v1224_v12, %v1160_v54  ;;  %v1797_v63 = vmul.f32 %v4090_v8, %v829_v28 }
 0x1fa   : > { %vm1732_vm1 = vcmp.ge.u32.totalorder %v1668_v50, 429496729  ;;  %v1605_v19 = vshrl.u32 %v1541_v47, 16  ;;  %v1798_v31 = vmul.f32 %v4091_v30, %v830_v39  ;;  %v1094_v59 = vadd.s32 %v1030_v55, %v2852_v51 }
 0x1fb   : > { %v1860_v0 = vsel %vm1732_vm1, %v1796_v53, 0.0  ;;  %v1542_v4 = vmul.u32 2221713035, %v1478_v49  ;;  %v1351_v1 = vmul.u32 2146121005, %v1287_v58  ;;  %v967_v15 = vadd.s32 %v2833_v62, %v899_v56 }
 0x1fc   : > { %1924 = vst [vmem:[%s3414_s4 + $0x188] sm:$0xff] %v1860_v0  ;;  %v1669_v16 = vxor.u32 %v1605_v19, %v1541_v47  ;;  %v831_v60 = vmul.f32 1.1111112, %v2326_v23  ;;  %v1352_v48 = vmul.u32 2146121005, %v1288_v6  ;;  %v1161_v45 = vxor.u32 %v2871_v14, %v1094_v59  ;;  %v640_v6 = vpop.xlane.xlu0 %639 }
 0x1fd   : > { %v1606_v5 = vshrl.u32 %v1542_v4, 16  ;;  %v1415_v7 = vshrl.u32 %v1351_v1, 15  ;;  %2331 = vrcp.f32 %v634_v2  ;;  %v1031_v35 = vmul.u32 128, %v967_v15 }
 0x1fe   : > { %vm1733_vm2 = vcmp.ge.u32.totalorder %v1669_v16, 429496729  ;;  %v1416_v38 = vshrl.u32 %v1352_v48, 15  ;;  %v900_v22 = vadd.s32 448, %v2831_v61  ;;  %v2328_v29 = vpop.eup %2327  ;;  %v1225_v40 = vshrl.u32 %v1161_v45, 16  ;;  %v642_v16 = vpop.xlane.xlu1 %641 }
 0x1ff   : > { %v1861_v42 = vsel %vm1733_vm2, %v1797_v63, 0.0  ;;  %v1670_v46 = vxor.u32 %v1606_v5, %v1542_v4  ;;  %v1479_v21 = vxor.u32 %v1415_v7, %v1351_v1  ;;  %v832_v36 = vmul.f32 1.1111112, %v2328_v29 }
 0x200   : > { %1925 = vst [vmem:[%s3414_s4 + $0x190] sm:$0xff] %v1861_v42  ;;  %v1480_v44 = vxor.u32 %v1416_v38, %v1352_v48  ;;  %v1095_v52 = vadd.s32 %v1031_v35, %v2852_v51  ;;  %v968_v10 = vadd.s32 %v2833_v62, %v900_v22  ;;  %v1289_v33 = vxor.u32 %v1225_v40, %v1161_v45  ;;  %v4094_v48 = vld [vmem:[#allocation54_spill] sm:$0xff] }
 0x201   : > { %vm1734_vm3 = vcmp.ge.u32.totalorder %v1670_v46, 429496729  ;;  %v1543_v32 = vmul.u32 2221713035, %v1479_v21  ;;  %2333 = vrcp.f32 %v636_v26  ;;  %v1799_v27 = vmul.f32 %v4092_v13, %v831_v60  ;;  %v2330_v3 = vpop.eup %2329 }
 0x202   : > { %v1862_v9 = vsel %vm1734_vm3, %v1798_v31, 0.0  ;;  %v1544_v43 = vmul.u32 2221713035, %v1480_v44  ;;  %v1162_v53 = vxor.u32 %v2871_v14, %v1095_v52  ;;  %v1353_v57 = vmul.u32 2146121005, %v1289_v33 }
 0x203   : > { %1926 = vst [vmem:[%s3414_s4 + $0x198] sm:$0xff] %v1862_v9  ;;  %v1607_v24 = vshrl.u32 %v1543_v32, 16  ;;  %v1032_v54 = vmul.u32 128, %v968_v10  ;;  %v901_v37 = vadd.s32 456, %v2831_v61  ;;  %v1800_v28 = vmul.f32 %v4093_v41, %v832_v36 }
 0x204   : > { %v1608_v25 = vshrl.u32 %v1544_v43, 16  ;;  %v1226_v18 = vshrl.u32 %v1162_v53, 16  ;;  %2335 = vrcp.f32 %v638_v11  ;;  %v1417_v34 = vshrl.u32 %v1353_v57, 15 }
 0x205   : > { %v1671_v20 = vxor.u32 %v1607_v24, %v1543_v32  ;;  %v1096_v12 = vadd.s32 %v1032_v54, %v2852_v51  ;;  %v969_v17 = vadd.s32 %v2833_v62, %v901_v37  ;;  %v833_v47 = vmul.f32 1.1111112, %v2330_v3 }
 0x206   : > { %v1672_v50 = vxor.u32 %v1608_v25, %v1544_v43  ;;  %v1290_v39 = vxor.u32 %v1226_v18, %v1162_v53  ;;  %v902_v56 = vadd.s32 464, %v2831_v61  ;;  %v1481_v23 = vxor.u32 %v1417_v34, %v1353_v57  ;;  %v4095_v53 = vld [vmem:[#allocation55_spill] sm:$0xff] }
 0x207   : > { %vm1735_vm4 = vcmp.ge.u32.totalorder %v1671_v20, 429496729  ;;  %v1163_v49 = vxor.u32 %v2871_v14, %v1096_v12  ;;  %v1033_v58 = vmul.u32 128, %v969_v17  ;;  %2337 = vrcp.f32 %v640_v6  ;;  %v4096_v12 = vld [vmem:[#allocation56_spill] sm:$0xff] }
 0x208   : > { %v1863_v55 = vsel %vm1735_vm4, %v1799_v27, 0.0  ;;  %vm1736_vm5 = vcmp.ge.u32.totalorder %v1672_v50, 429496729  ;;  %v1354_v19 = vmul.u32 2146121005, %v1290_v39  ;;  %v970_v8 = vadd.s32 %v2833_v62, %v902_v56  ;;  %v644_v27 = vpop.xlane.xlu0 %643 }
 0x209   : > { %1927 = vst [vmem:[%s3414_s4 + $0x1a0] sm:$0xff] %v1863_v55  ;;  %v1864_v63 = vsel %vm1736_vm5, %v1800_v28, 0.0  ;;  %v1545_v30 = vmul.u32 2221713035, %v1481_v23  ;;  %v1227_v31 = vshrl.u32 %v1163_v49, 16  ;;  %v1097_v2 = vadd.s32 %v1033_v58, %v2852_v51  ;;  %v4097_v58 = vld [vmem:[#allocation57_spill] sm:$0xff] }
 0x20a   : > { %v2332_v0 = vpop.eup %2331  ;;  %1928 = vst [vmem:[%s3414_s4 + $0x1a8] sm:$0xff] %v1864_v63  ;;  %v1418_v4 = vshrl.u32 %v1354_v19, 15  ;;  %v1034_v1 = vmul.u32 128, %v970_v8  ;;  %v903_v59 = vadd.s32 472, %v2831_v61  ;;  %v1801_v15 = vmul.f32 %v4094_v48, %v833_v47 }
 0x20b   : > { %v1609_v60 = vshrl.u32 %v1545_v30, 16  ;;  %v1291_v5 = vxor.u32 %v1227_v31, %v1163_v49  ;;  %v1164_v7 = vxor.u32 %v2871_v14, %v1097_v2  ;;  %v834_v38 = vmul.f32 1.1111112, %v2332_v0  ;;  %v646_v0 = vpop.xlane.xlu1 %645 }
 0x20c   : > { %v1482_v45 = vxor.u32 %v1418_v4, %v1354_v19  ;;  %v1098_v35 = vadd.s32 %v1034_v1, %v2852_v51  ;;  %v971_v22 = vadd.s32 %v2833_v62, %v903_v59  ;;  %2339 = vrcp.f32 %v642_v16 }
 0x20d   : > { %v1673_v26 = vxor.u32 %v1609_v60, %v1545_v30  ;;  %v1355_v29 = vmul.u32 2146121005, %v1291_v5  ;;  %v1228_v42 = vshrl.u32 %v1164_v7, 16  ;;  %v904_v36 = vadd.s32 480, %v2831_v61 }
 0x20e   : > { %v2334_v46 = vpop.eup %2333  ;;  %v1546_v21 = vmul.u32 2221713035, %v1482_v45  ;;  %v1165_v40 = vxor.u32 %v2871_v14, %v1098_v35  ;;  %v1035_v44 = vmul.u32 128, %v971_v22  ;;  %v1802_v3 = vmul.f32 %v4095_v53, %v834_v38 }
 0x20f   : > { %vm1737_vm6 = vcmp.ge.u32.totalorder %v1673_v26, 429496729  ;;  %v1419_v52 = vshrl.u32 %v1355_v29, 15  ;;  %v835_v10 = vmul.f32 1.1111112, %v2334_v46  ;;  %v1292_v32 = vxor.u32 %v1228_v42, %v1164_v7  ;;  %v648_v7 = vpop.xlane.xlu0 %647 }
 0x210   : > { %v1865_v33 = vsel %vm1737_vm6, %v1801_v15, 0.0  ;;  %v1610_v11 = vshrl.u32 %v1546_v21, 16  ;;  %v1229_v9 = vshrl.u32 %v1165_v40, 16  ;;  %v1099_v13 = vadd.s32 %v1035_v44, %v2852_v51 }
 0x211   : > { %v2336_v43 = vpop.eup %2335  ;;  %1929 = vst [vmem:[%s3414_s4 + $0x1b0] sm:$0xff] %v1865_v33  ;;  %v1483_v24 = vxor.u32 %v1419_v52, %v1355_v29  ;;  %v1356_v57 = vmul.u32 2146121005, %v1292_v32  ;;  %v972_v54 = vadd.s32 %v2833_v62, %v904_v36  ;;  %2341 = vrcp.f32 %v644_v27  ;;  %v4098_v29 = vld [vmem:[#allocation58_spill] sm:$0xff] }
 0x212   : > { %v1674_v37 = vxor.u32 %v1610_v11, %v1546_v21  ;;  %v836_v25 = vmul.f32 1.1111112, %v2336_v43  ;;  %v1293_v41 = vxor.u32 %v1229_v9, %v1165_v40  ;;  %v1166_v28 = vxor.u32 %v2871_v14, %v1099_v13 }
 0x213   : > { %v1547_v18 = vmul.u32 2221713035, %v1483_v24  ;;  %v1420_v20 = vshrl.u32 %v1356_v57, 15  ;;  %v1036_v34 = vmul.u32 128, %v972_v54  ;;  %v1803_v17 = vmul.f32 %v4096_v12, %v835_v10  ;;  %v650_v54 = vpop.xlane.xlu1 %649 }
 0x214   : > { %vm1738_vm7 = vcmp.ge.u32.totalorder %v1674_v37, 429496729  ;;  %v1357_v50 = vmul.u32 2146121005, %v1293_v41  ;;  %v1230_v47 = vshrl.u32 %v1166_v28, 16  ;;  %v1804_v6 = vmul.f32 %v4097_v58, %v836_v25  ;;  %v2338_v63 = vpop.eup %2337  ;;  %v4099_v25 = vld [vmem:[#allocation59_spill] sm:$0xff] }
 0x215   : > { %v1866_v39 = vsel %vm1738_vm7, %v1802_v3, 0.0  ;;  %v1611_v56 = vshrl.u32 %v1547_v18, 16  ;;  %v1484_v23 = vxor.u32 %v1420_v20, %v1356_v57  ;;  %v1100_v49 = vadd.s32 %v1036_v34, %v2852_v51  ;;  %v4100_v58 = vld [vmem:[#allocation60_spill] sm:$0xff] }
 0x216   : > { %1930 = vst [vmem:[%s3414_s4 + $0x1b8] sm:$0xff] %v1866_v39  ;;  %v1421_v55 = vshrl.u32 %v1357_v50, 15  ;;  %v1294_v19 = vxor.u32 %v1230_v47, %v1166_v28  ;;  %v905_v8 = vadd.s32 488, %v2831_v61  ;;  %v906_v4 = vadd.s32 496, %v2831_v61 }
 0x217   : > { %v1675_v30 = vxor.u32 %v1611_v56, %v1547_v18  ;;  %v1548_v31 = vmul.u32 2221713035, %v1484_v23  ;;  %v1167_v2 = vxor.u32 %v2871_v14, %v1100_v49  ;;  %v837_v59 = vmul.f32 1.1111112, %v2338_v63 }
 0x218   : > { %v1485_v1 = vxor.u32 %v1421_v55, %v1357_v50  ;;  %v1358_v16 = vmul.u32 2146121005, %v1294_v19  ;;  %v973_v60 = vadd.s32 %v2833_v62, %v905_v8  ;;  %v974_v5 = vadd.s32 %v2833_v62, %v906_v4 }
 0x219   : > { %vm1739_vm8 = vcmp.ge.u32.totalorder %v1675_v30, 429496729  ;;  %v1612_v48 = vshrl.u32 %v1548_v31, 16  ;;  %v1231_v15 = vshrl.u32 %v1167_v2, 16  ;;  %v2340_v45 = vpop.eup %2339  ;;  %2343 = vrcp.f32 %v646_v0 }
 0x21a   : > { %v1867_v38 = vsel %vm1739_vm8, %v1803_v17, 0.0  ;;  %v1549_v35 = vmul.u32 2221713035, %v1485_v1  ;;  %v1422_v22 = vshrl.u32 %v1358_v16, 15  ;;  %v1805_v42 = vmul.f32 %v4098_v29, %v837_v59 }
 0x21b   : > { %1931 = vst [vmem:[%s3414_s4 + $0x1c0] sm:$0xff] %v1867_v38  ;;  %v1676_v26 = vxor.u32 %v1612_v48, %v1548_v31  ;;  %v1295_v46 = vxor.u32 %v1231_v15, %v1167_v2  ;;  %v1037_v21 = vmul.u32 128, %v973_v60  ;;  %v1038_v36 = vmul.u32 128, %v974_v5 }
 0x21c   : > { %v1613_v40 = vshrl.u32 %v1549_v35, 16  ;;  %v1486_v44 = vxor.u32 %v1422_v22, %v1358_v16  ;;  %2345 = vrcp.f32 %v648_v7  ;;  %v838_v52 = vmul.f32 1.1111112, %v2340_v45  ;;  %v4101_v7 = vld [vmem:[#allocation61_spill] sm:$0xff]  ;;  %v4102_v22 = vld [vmem:[#allocation62_spill] sm:$0xff] }
 0x21d   : > { %vm1740_vm9 = vcmp.ge.u32.totalorder %v1676_v26, 429496729  ;;  %v1359_v10 = vmul.u32 2146121005, %v1295_v46  ;;  %v1101_v32 = vadd.s32 %v1037_v21, %v2852_v51  ;;  %v1102_v13 = vadd.s32 %v1038_v36, %v2852_v51 }
 0x21e   : > { %v1868_v33 = vsel %vm1740_vm9, %v1804_v6, 0.0  ;;  %v1677_v11 = vxor.u32 %v1613_v40, %v1549_v35  ;;  %v1550_v9 = vmul.u32 2221713035, %v1486_v44  ;;  %v907_v53 = vadd.s32 504, %v2831_v61  ;;  %v2342_v3 = vpop.eup %2341 }
 0x21f   : > { %1932 = vst [vmem:[%s3414_s4 + $0x1c8] sm:$0xff] %v1868_v33  ;;  %v1423_v27 = vshrl.u32 %v1359_v10, 15  ;;  %v1168_v43 = vxor.u32 %v2871_v14, %v1101_v32  ;;  %v1169_v57 = vxor.u32 %v2871_v14, %v1102_v13  ;;  %v1806_v41 = vmul.f32 %v4099_v25, %v838_v52  ;;  %v4103_v32 = vld [vmem:[#allocation63_spill] sm:$0xff] }
 0x220   : > { %vm1741_vm10 = vcmp.ge.u32.totalorder %v1677_v11, 429496729  ;;  %v1614_v24 = vshrl.u32 %v1550_v9, 16  ;;  %v839_v34 = vmul.f32 1.1111112, %v2342_v3  ;;  %v975_v17 = vadd.s32 %v2833_v62, %v907_v53 }
 0x221   : > { %v1869_v37 = vsel %vm1741_vm10, %v1805_v42, 0.0  ;;  %v1487_v28 = vxor.u32 %v1423_v27, %v1359_v10  ;;  %v1232_v18 = vshrl.u32 %v1168_v43, 16  ;;  %v1233_v12 = vshrl.u32 %v1169_v57, 16 }
 0x222   : > { %1933 = vst [vmem:[%s3414_s4 + $0x1d0] sm:$0xff] %v1869_v37  ;;  %v1678_v20 = vxor.u32 %v1614_v24, %v1550_v9  ;;  %2347 = vrcp.f32 %v650_v54  ;;  %v1039_v39 = vmul.u32 128, %v975_v17  ;;  %v1807_v6 = vmul.f32 %v4100_v58, %v839_v34 }
 0x223   : > { %v1551_v50 = vmul.u32 2221713035, %v1487_v28  ;;  %v1296_v61 = vxor.u32 %v1232_v18, %v1168_v43  ;;  %v1297_v47 = vxor.u32 %v1233_v12, %v1169_v57 }
 0x224   : > { %vm1742_vm11 = vcmp.ge.u32.totalorder %v1678_v20, 429496729  ;;  %v1103_v19 = vadd.s32 %v1039_v39, %v2852_v51 }
 0x225   : > { %v1870_v56 = vsel %vm1742_vm11, %v1806_v41, 0.0  ;;  %v1615_v23 = vshrl.u32 %v1551_v50, 16  ;;  %v1360_v49 = vmul.u32 2146121005, %v1296_v61  ;;  %v1361_v55 = vmul.u32 2146121005, %v1297_v47 }
 0x226   : > { %1934 = vst [vmem:[%s3414_s4 + $0x1d8] sm:$0xff] %v1870_v56  ;;  %v2344_v8 = vpop.eup %2343  ;;  %v1170_v31 = vxor.u32 %v2871_v14, %v1103_v19 }
 0x227   : > { %v1679_v63 = vxor.u32 %v1615_v23, %v1551_v50  ;;  %v1424_v30 = vshrl.u32 %v1360_v49, 15  ;;  %v1425_v62 = vshrl.u32 %v1361_v55, 15  ;;  %v840_v1 = vmul.f32 1.1111112, %v2344_v8 }
 0x228   : > { %v1234_v16 = vshrl.u32 %v1170_v31, 16 }
 0x229   : > { %v2346_v2 = vpop.eup %2345  ;;  %vm1743_vm12 = vcmp.ge.u32.totalorder %v1679_v63, 429496729  ;;  %v1488_v0 = vxor.u32 %v1424_v30, %v1360_v49  ;;  %v1489_v59 = vxor.u32 %v1425_v62, %v1361_v55  ;;  %v1808_v45 = vmul.f32 %v4101_v7, %v840_v1 }
 0x22a   : > { %v1871_v4 = vsel %vm1743_vm12, %v1807_v6, 0.0  ;;  %v841_v48 = vmul.f32 1.1111112, %v2346_v2  ;;  %v1298_v5 = vxor.u32 %v1234_v16, %v1170_v31 }
 0x22b   : > { %1935 = vst [vmem:[%s3414_s4 + $0x1e0] sm:$0xff] %v1871_v4  ;;  %v1552_v60 = vmul.u32 2221713035, %v1488_v0  ;;  %v1553_v15 = vmul.u32 2221713035, %v1489_v59 }
 0x22c   : > { %v1362_v35 = vmul.u32 2146121005, %v1298_v5  ;;  %v1809_v26 = vmul.f32 %v4102_v22, %v841_v48 }
 0x22d   : > { %v1616_v51 = vshrl.u32 %v1552_v60, 16  ;;  %v1617_v38 = vshrl.u32 %v1553_v15, 16 }
 0x22e   : > { %v1426_v46 = vshrl.u32 %v1362_v35, 15 }
 0x22f   : > { %v1680_v14 = vxor.u32 %v1616_v51, %v1552_v60  ;;  %v2348_v29 = vpop.eup %2347  ;;  %v1681_v42 = vxor.u32 %v1617_v38, %v1553_v15 }
 0x230   : > { %v1490_v40 = vxor.u32 %v1426_v46, %v1362_v35  ;;  %v842_v36 = vmul.f32 1.1111112, %v2348_v29 }
 0x231   : > { %vm1744_vm13 = vcmp.ge.u32.totalorder %v1680_v14, 429496729  ;;  %vm1745_vm14 = vcmp.ge.u32.totalorder %v1681_v42, 429496729 }
 0x232   : > { %v1872_v21 = vsel %vm1744_vm13, %v1808_v45, 0.0  ;;  %v1873_v44 = vsel %vm1745_vm14, %v1809_v26, 0.0  ;;  %v1554_v52 = vmul.u32 2221713035, %v1490_v40  ;;  %v1810_v33 = vmul.f32 %v4103_v32, %v842_v36 }
 0x233   : > { %1936 = vst [vmem:[%s3414_s4 + $0x1e8] sm:$0xff] %v1872_v21  ;;  %1937 = vst [vmem:[%s3414_s4 + $0x1f0] sm:$0xff] %v1873_v44 }
 0x234   : > { %v1618_v10 = vshrl.u32 %v1554_v52, 16 }
 0x236   : > { %v1682_v11 = vxor.u32 %v1618_v10, %v1554_v52 }
 0x238   : > { %vm1746_vm15 = vcmp.ge.u32.totalorder %v1682_v11, 429496729 }
 0x239   : > { %v1874_v9 = vsel %vm1746_vm15, %v1810_v33, 0.0 }
 0x23a   : > { %1938 = vst [vmem:[%s3414_s4 + $0x1f8] sm:$0xff] %v1874_v9 }
 0x23b   : > { %2398 = shalt.err (!%p2395_p9)
}
 0x23c   : > { %s2399_s24 = scalar_lea.hbm %s3848_s10, 8192  ;;  %s2403_s28 = scalar_lea.hbm %s3895_s2, 24576 }
 0x23d   : > { %p2400_p13 = scmp.ne.s32.totalorder %s3848_s10, %s2399_s24  ;;  %p2404_p2 = scmp.lt.s32.totalorder %s3848_s10, %s3895_s2 }
 0x23e   : > { %p2405_p3 = scmp.lt.s32.totalorder %s2403_s28, %s2399_s24 }
 0x23f   : > { %p2401_p1 = pnand %p2400_p13, %p4104_p11 }
 0x240   : > { %p2406_p6 = por %p2405_p3, %p2404_p2 }
 0x241   : > { %p2402_p0 = pneg %p2401_p1 }
 0x243   : > { %p2407_p10 = pnand %p2406_p6, %p2402_p0 }
 0x245   : > { %2410 = shalt.err (!%p2407_p10)
}
 0x246   : > { %s2455_s21 = smov 128   ;;  %s2456_s29 = smov 8  }
 0x247   : > { %2045 = dma.vmem_to_hbm [thread:$0]  (%p4104_p11), %s3850_s7, 8192, %s3848_s10, %s1940_s15, %s2455_s21, %s2455_s21, %s2456_s29  }
 0x248 PF: > { %p2056_p12 = scmp.ge.s32.totalorder %s2449_s14, 2  ;;  %s1968_s3 = sand.u32 1, %s2437_s11  }
 0x249   : > { %p4105_p4 = scmp.ne.s32.totalorder %s3965_s23, 0  ;;  %s1969_s4 = scalar_lea.sflag [#allocation6], %s1968_s3 }
 0x24b   : > { %p2052_p5 = pnand %p2056_p12, %p4105_p4 }
 0x24d   : > { %p2053_p7 = pneg %p2052_p5 }
 0x24f   : > { %2432 = dma.done.wait (%p2053_p7), %s1969_s4, 8192  }
 0x250   : > { %2434 = vsyncadd (%p2053_p7), %s1969_s4, 4294959104  ;;  %p16_p8 = scmp.ge.s32.totalorder %s2500_s16, 5   ;;  %s4106_s11 = smov %s2441_s12 }
 0x251   : > { %s4107_s12 = smov %s2445_s13  ;;  %s4108_s13 = smov %s2512_s19 }
 0x252   : > { %s4109_s14 = smov %s2500_s16  ;;  %18 = sbr.rel (!%p16_p8) target bundleno = 7 (0x7), region = 69 }
 0x257   :  { %1974 = vsyncpa [#allocation5], 1 }
 0x258   :  { %1976 = vsyncpa [#allocation5 + $0x1], 1 }
 0x259   :  { %1977 = vsyncpa [#allocation6], 1 }
 0x25a   :  { %1979 = vsyncpa [#allocation6 + $0x1], 1 }

</bundles_post_ra>
